<compile_context>
chip_gen: v7x
topology: tpu7x:2x2x1
jax: 0.10.0
libtpu: 0.0.40
codegen_flags: <defaults>
</compile_context>

<pallas_src>
import functools

import jax
import jax.numpy as jnp
from jax import lax
from jax.experimental import pallas as pl
from jax.experimental.pallas import tpu as pltpu

LANE = 128


def _tile_padded_bytes(h, w, dtype):
    """Real VMEM bytes of one (h, w) slab after (sublane, 128)-tile padding."""
    item = jnp.dtype(dtype).itemsize
    sub = max(32 // item, 8)            # f32/int32: 8, bf16: 16, int8/bool: 32
    hp = pl.cdiv(h, sub) * sub
    wp = pl.cdiv(w, LANE) * LANE
    return hp * wp * item


def _input_budget_bytes():
    """Single-copy input-block budget per grid step (Pallas double-buffers it)."""
    try:
        cap = pltpu.get_tpu_info().vmem_capacity_bytes
    except Exception:                   # non-TPU tracing / older jax: be conservative
        cap = 64 << 20
    # v5e/v6e: 128 MiB physical -> bigger blocks amortize per-step overhead.
    # v7x: 64 MiB physical -> stay conservative.
    return (12 << 20) if cap >= (96 << 20) else (6 << 20)


def _ce_stats_kernel(pred_ref, tgt_ref, loss_ref, stats_ref, *, inv_s, true_s):
    """One block of tn batch rows.

    pred_ref : (tn, 2, H, W) logits, original dtype (class 0 / class 1)
    tgt_ref  : (tn, H, W)    integer labels in {0, 1}
    loss_ref : (tn, 128) float32; lane 0 = per-row mean cross entropy
    stats_ref: (tn, 128) int32;   lanes 0..3 = hit, miss, fa, cn
    """
    z0 = pred_ref[:, 0, :, :]                 # (tn, H, W) native dtype
    z1 = pred_ref[:, 1, :, :]
    t1 = tgt_ref[...] == 1                    # (tn, H, W) bool

    # Margin toward class 1, kept in the input dtype (bf16 VPU on v6e/v7x).
    m = z1 - z0
    pred1 = m > 0                             # ties -> class 0 (torch.topk first index)

    # Two-class cross entropy, purely lane-wise:
    #   -log_softmax(z)[t] = softplus(z_other - z_target)
    d = jnp.where(t1, -m, m).astype(jnp.float32)
    ce = jnp.maximum(d, 0.0) + jnp.log(1.0 + jnp.exp(-jnp.abs(d)))

    def _rowsum(x):                           # (tn, H, W) -> (tn, 1)
        return jnp.sum(jnp.sum(x, axis=2), axis=1, keepdims=True)

    row_loss = _rowsum(ce) * inv_s            # per-row mean CE

    hit = _rowsum((pred1 & t1).astype(jnp.int32))   # pred 1, target 1
    s_p = _rowsum(pred1.astype(jnp.int32))          # total predicted 1
    s_t = _rowsum(t1.astype(jnp.int32))             # total target 1
    fa = s_p - hit                                  # pred 1, target 0
    miss = s_t - hit                                # pred 0, target 1
    cn = true_s - s_p - s_t + hit                   # pred 0, target 0

    # Lane-dense unmasked stores; lanes beyond the payload are zero.
    lane = lax.broadcasted_iota(jnp.int32, loss_ref.shape, 1)
    loss_ref[...] = jnp.where(lane == 0, row_loss, 0.0)
    stats_ref[...] = (jnp.where(lane == 0, hit, 0)
                      + jnp.where(lane == 1, miss, 0)
                      + jnp.where(lane == 2, fa, 0)
                      + jnp.where(lane == 3, cn, 0))


def nims_ce_loss_pallas(preds, targets):
    """preds: (N, 2, H, W) float; targets: (N, H, W) int in {0, 1}.

    Returns (per-row mean CE (N,) f32, stats (N, 4) int32 = [hit, miss, fa, cn]).
    """
    N, C, H, W = preds.shape
    assert C == 2, "kernel is specialized to num_classes == 2"
    assert targets.shape == (N, H, W)
    assert jnp.issubdtype(targets.dtype, jnp.integer)

    S = H * W

    # Batch rows per grid step from the *tiled* VMEM footprint (double-buffered).
    row_bytes = 2 * _tile_padded_bytes(H, W, preds.dtype) + _tile_padded_bytes(H, W, targets.dtype)
    tn = max(8, (_input_budget_bytes() // row_bytes) // 8 * 8)
    # v7x has 2 TensorCores: keep the "parallel" batch axis at >= 2 grid steps.
    tn = min(tn, max(8, pl.cdiv(pl.cdiv(N, 2), 8) * 8))
    # TODO(synk): for extremely large grids (> ~0.7 M pixels per row) the station
    # axes (H, W) should be tiled too instead of relying on tn >= 8.
    G = pl.cdiv(N, tn)
    NP = G * tn        # outputs padded to whole blocks; inputs stay un-padded.

    kernel = functools.partial(_ce_stats_kernel, inv_s=1.0 / S, true_s=S)
    loss_rows, stats = pl.pallas_call(
        kernel,
        out_shape=(jax.ShapeDtypeStruct((NP, LANE), jnp.float32),
                   jax.ShapeDtypeStruct((NP, LANE), jnp.int32)),
        grid_spec=pltpu.PrefetchScalarGridSpec(
            num_scalar_prefetch=0,
            grid=(G,),
            in_specs=[pl.BlockSpec((tn, 2, H, W), lambda g: (g, 0, 0, 0)),
                      pl.BlockSpec((tn, H, W), lambda g: (g, 0, 0))],
            out_specs=[pl.BlockSpec((tn, LANE), lambda g: (g, 0)),
                       pl.BlockSpec((tn, LANE), lambda g: (g, 0))],
        ),
        compiler_params=pltpu.CompilerParams(
            dimension_semantics=("parallel",),      # no shared accumulator
            vmem_limit_bytes=48 * 1024 * 1024),     # v5e default (16 MiB) is too small
    )(preds, targets)

    return loss_rows[:N, 0], stats[:N, :4]


def nims_cross_entropy_forward(preds, targets, mode="train", num_classes=2):
    """Mirror of NIMSCrossEntropyLoss.forward (use_weights=False path).

    preds   : (N, 2, H, W) float (NCHW, like the PyTorch module)
    targets : (N, H, W)    int labels in {0, 1}
    returns : (loss, hit[N], miss[N], fa[N], cn[N])
    """
    N, C, H, W = preds.shape
    assert N == targets.shape[0]
    assert C == num_classes == 2

    # remove_missing_station() only reorders the (target==0 | target==1) pixels.
    # Every quantity computed here (per-station CE mean, hit/miss/fa/cn) is
    # permutation-invariant over stations, so the argsort + gather is skipped and
    # the (H, W) grid is consumed in place (targets assumed to be in {0, 1}).
    loss_rows, stats = nims_ce_loss_pallas(preds, targets)
    loss = jnp.mean(loss_rows)                # torch.mean(torch.mean(loss, dim=1))
    hit, miss, fa, cn = stats[:, 0], stats[:, 1], stats[:, 2], stats[:, 3]
    # TODO(synk): use_weights=True branch (sklearn compute_class_weight) not
    # implemented; the original forward computes but never uses its result.
    return loss, hit, miss, fa, cn


if __name__ == "__main__":
    key = jax.random.PRNGKey(0)

    def reference(preds, targets):
        N, C, H, W = preds.shape
        sp = preds.reshape(N, C, H * W).astype(jnp.float32)
        st = targets.reshape(N, H * W).astype(jnp.int32)
        logp = jax.nn.log_softmax(sp, axis=1)
        ce = -jnp.take_along_axis(logp, st[:, None, :], axis=1)[:, 0, :]
        loss = jnp.mean(jnp.mean(ce, axis=1))
        pred_lab = jnp.argmax(sp, axis=1)
        hit = jnp.sum((pred_lab == 1) & (st == 1), axis=1)
        miss = jnp.sum((pred_lab == 0) & (st == 1), axis=1)
        fa = jnp.sum((pred_lab == 1) & (st == 0), axis=1)
        cn = jnp.sum((pred_lab == 0) & (st == 0), axis=1)
        return loss, hit, miss, fa, cn

    ok = True
    # (N, H, W, target dtype):
    #   (2, 16, 16, int32): lane padding, single grid step
    #   (2, 24, 24, int8) : narrow int8 target stream
    #   (10, 24, 24, int8): multi-step grid + ragged last batch block
    for (N, H, W, tdt) in [(2, 16, 16, jnp.int32), (2, 24, 24, jnp.int8), (10, 24, 24, jnp.int8)]:
        key, kp, kt = jax.random.split(key, 3)
        preds = jax.random.normal(kp, (N, 2, H, W), dtype=jnp.float32)
        targets = jax.random.bernoulli(kt, 0.3, (N, H, W)).astype(tdt)

        loss, hit, miss, fa, cn = nims_cross_entropy_forward(preds, targets, mode="train")
        jax.block_until_ready((loss, hit, miss, fa, cn))

        r_loss, r_hit, r_miss, r_fa, r_cn = reference(preds, targets)
        ok &= bool(jnp.allclose(loss, r_loss, atol=1e-5, rtol=1e-5))
        ok &= bool(jnp.array_equal(hit, r_hit))
        ok &= bool(jnp.array_equal(miss, r_miss))
        ok &= bool(jnp.array_equal(fa, r_fa))
        ok &= bool(jnp.array_equal(cn, r_cn))

    assert ok, "mismatch vs pure-JAX reference"
    print("KERNEL_OK")
</pallas_src>

<mosaic_0001>
module attributes {stable_mosaic.version = 11 : i64} {
  func.func @_ce_stats_kernel(%arg0: i32, %arg1: memref<8x2x16x16xf32, #tpu.memory_space<vmem>>, %arg2: memref<8x16x16xi32, #tpu.memory_space<vmem>>, %arg3: memref<8x128xf32, #tpu.memory_space<vmem>>, %arg4: memref<8x128xi32, #tpu.memory_space<vmem>>) attributes {dimension_semantics = [#tpu.dimension_semantics<parallel>], iteration_bounds = array<i64: 1>, scalar_prefetch = 0 : i64, scratch_operands = 0 : i64, tpu.core_type = #tpu.core_type<tc>, window_params = [{transform_indices = @transform_0, window_bounds = array<i64: 8, 2, 16, 16>}, {transform_indices = @transform_1, window_bounds = array<i64: 8, 16, 16>}, {transform_indices = @transform_2, window_bounds = array<i64: 8, 128>}, {transform_indices = @transform_3, window_bounds = array<i64: 8, 128>}]} {
    %c0 = arith.constant 0 : index
    %c0_0 = arith.constant 0 : index
    %c0_1 = arith.constant 0 : index
    %c0_2 = arith.constant 0 : index
    %0 = vector.load %arg1[%c0, %c0_0, %c0_1, %c0_2] : memref<8x2x16x16xf32, #tpu.memory_space<vmem>>, vector<8x1x16x16xf32>
    %1 = vector.shape_cast %0 : vector<8x1x16x16xf32> to vector<8x16x16xf32>
    %c0_3 = arith.constant 0 : index
    %c1 = arith.constant 1 : index
    %c0_4 = arith.constant 0 : index
    %c0_5 = arith.constant 0 : index
    %2 = vector.load %arg1[%c0_3, %c1, %c0_4, %c0_5] : memref<8x2x16x16xf32, #tpu.memory_space<vmem>>, vector<8x1x16x16xf32>
    %3 = vector.shape_cast %2 : vector<8x1x16x16xf32> to vector<8x16x16xf32>
    %c0_6 = arith.constant 0 : index
    %c0_7 = arith.constant 0 : index
    %c0_8 = arith.constant 0 : index
    %4 = vector.load %arg2[%c0_6, %c0_7, %c0_8] : memref<8x16x16xi32, #tpu.memory_space<vmem>>, vector<8x16x16xi32>
    %c1_i32 = arith.constant 1 : i32
    %5 = vector.broadcast %c1_i32 : i32 to vector<8x16x16xi32>
    %6 = arith.cmpi eq, %4, %5 : vector<8x16x16xi32>
    %7 = arith.subf %3, %1 : vector<8x16x16xf32>
    %cst = arith.constant 0.000000e+00 : f32
    %8 = vector.broadcast %cst : f32 to vector<8x16x16xf32>
    %9 = arith.cmpf ogt, %7, %8 : vector<8x16x16xf32>
    %cst_9 = arith.constant 0.000000e+00 : f32
    %10 = vector.broadcast %cst_9 : f32 to vector<8x16x16xf32>
    %11 = arith.subf %10, %7 : vector<8x16x16xf32>
    %12 = arith.select %6, %11, %7 : vector<8x16x16xi1>, vector<8x16x16xf32>
    %cst_10 = arith.constant 0.000000e+00 : f32
    %13 = vector.broadcast %cst_10 : f32 to vector<8x16x16xf32>
    %14 = arith.maximumf %12, %13 : vector<8x16x16xf32>
    %15 = math.absf %12 : vector<8x16x16xf32>
    %cst_11 = arith.constant 0.000000e+00 : f32
    %16 = vector.broadcast %cst_11 : f32 to vector<8x16x16xf32>
    %17 = arith.subf %16, %15 : vector<8x16x16xf32>
    %18 = math.exp %17 : vector<8x16x16xf32>
    %cst_12 = arith.constant 1.000000e+00 : f32
    %19 = vector.broadcast %cst_12 : f32 to vector<8x16x16xf32>
    %20 = arith.addf %19, %18 : vector<8x16x16xf32>
    %21 = math.log %20 : vector<8x16x16xf32>
    %22 = arith.addf %14, %21 : vector<8x16x16xf32>
    %cst_13 = arith.constant dense<0.000000e+00> : vector<8x16xf32>
    %23 = vector.multi_reduction <add>, %22, %cst_13 [2] : vector<8x16x16xf32> to vector<8x16xf32>
    %cst_14 = arith.constant dense<0.000000e+00> : vector<8xf32>
    %24 = vector.multi_reduction <add>, %23, %cst_14 [1] : vector<8x16xf32> to vector<8xf32>
    %25 = vector.shape_cast %24 : vector<8xf32> to vector<8x1xf32>
    %cst_15 = arith.constant 3.906250e-03 : f32
    %26 = vector.broadcast %cst_15 : f32 to vector<8x1xf32>
    %27 = arith.mulf %25, %26 : vector<8x1xf32>
    %28 = arith.andi %9, %6 : vector<8x16x16xi1>
    %29 = arith.extui %28 : vector<8x16x16xi1> to vector<8x16x16xi32>
    %cst_16 = arith.constant dense<0> : vector<8x16xi32>
    %30 = vector.multi_reduction <add>, %29, %cst_16 [2] : vector<8x16x16xi32> to vector<8x16xi32>
    %cst_17 = arith.constant dense<0> : vector<8xi32>
    %31 = vector.multi_reduction <add>, %30, %cst_17 [1] : vector<8x16xi32> to vector<8xi32>
    %32 = vector.shape_cast %31 : vector<8xi32> to vector<8x1xi32>
    %33 = arith.extui %9 : vector<8x16x16xi1> to vector<8x16x16xi32>
    %cst_18 = arith.constant dense<0> : vector<8x16xi32>
    %34 = vector.multi_reduction <add>, %33, %cst_18 [2] : vector<8x16x16xi32> to vector<8x16xi32>
    %cst_19 = arith.constant dense<0> : vector<8xi32>
    %35 = vector.multi_reduction <add>, %34, %cst_19 [1] : vector<8x16xi32> to vector<8xi32>
    %36 = vector.shape_cast %35 : vector<8xi32> to vector<8x1xi32>
    %37 = arith.extui %6 : vector<8x16x16xi1> to vector<8x16x16xi32>
    %cst_20 = arith.constant dense<0> : vector<8x16xi32>
    %38 = vector.multi_reduction <add>, %37, %cst_20 [2] : vector<8x16x16xi32> to vector<8x16xi32>
    %cst_21 = arith.constant dense<0> : vector<8xi32>
    %39 = vector.multi_reduction <add>, %38, %cst_21 [1] : vector<8x16xi32> to vector<8xi32>
    %40 = vector.shape_cast %39 : vector<8xi32> to vector<8x1xi32>
    %41 = arith.subi %36, %32 : vector<8x1xi32>
    %42 = arith.subi %40, %32 : vector<8x1xi32>
    %c256_i32 = arith.constant 256 : i32
    %43 = vector.broadcast %c256_i32 : i32 to vector<8x1xi32>
    %44 = arith.subi %43, %36 : vector<8x1xi32>
    %45 = arith.subi %44, %40 : vector<8x1xi32>
    %46 = arith.addi %45, %32 : vector<8x1xi32>
    %47 = tpu.iota {dimensions = array<i32: 1>} : vector<8x128xi32>
    %c0_i32 = arith.constant 0 : i32
    %48 = vector.broadcast %c0_i32 : i32 to vector<8x128xi32>
    %49 = arith.cmpi eq, %47, %48 : vector<8x128xi32>
    %cst_22 = arith.constant 0.000000e+00 : f32
    %50 = vector.shape_cast %27 : vector<8x1xf32> to vector<8x1xf32>
    %51 = vector.broadcast %50 : vector<8x1xf32> to vector<8x128xf32>
    %52 = vector.broadcast %cst_22 : f32 to vector<8x128xf32>
    %53 = arith.select %49, %51, %52 : vector<8x128xi1>, vector<8x128xf32>
    %c0_23 = arith.constant 0 : index
    %c0_24 = arith.constant 0 : index
    %54 = vector.load %arg3[%c0_23, %c0_24] : memref<8x128xf32, #tpu.memory_space<vmem>>, vector<8x128xf32>
    tpu.vector_store %arg3[%c0_23, %c0_24], %53 {strides = array<i32>} : memref<8x128xf32, #tpu.memory_space<vmem>>, vector<8x128xf32>,
    %c0_i32_25 = arith.constant 0 : i32
    %55 = vector.broadcast %c0_i32_25 : i32 to vector<8x128xi32>
    %56 = arith.cmpi eq, %47, %55 : vector<8x128xi32>
    %c0_i32_26 = arith.constant 0 : i32
    %57 = vector.shape_cast %32 : vector<8x1xi32> to vector<8x1xi32>
    %58 = vector.broadcast %57 : vector<8x1xi32> to vector<8x128xi32>
    %59 = vector.broadcast %c0_i32_26 : i32 to vector<8x128xi32>
    %60 = arith.select %56, %58, %59 : vector<8x128xi1>, vector<8x128xi32>
    %c1_i32_27 = arith.constant 1 : i32
    %61 = vector.broadcast %c1_i32_27 : i32 to vector<8x128xi32>
    %62 = arith.cmpi eq, %47, %61 : vector<8x128xi32>
    %c0_i32_28 = arith.constant 0 : i32
    %63 = vector.shape_cast %42 : vector<8x1xi32> to vector<8x1xi32>
    %64 = vector.broadcast %63 : vector<8x1xi32> to vector<8x128xi32>
    %65 = vector.broadcast %c0_i32_28 : i32 to vector<8x128xi32>
    %66 = arith.select %62, %64, %65 : vector<8x128xi1>, vector<8x128xi32>
    %67 = arith.addi %60, %66 : vector<8x128xi32>
    %c2_i32 = arith.constant 2 : i32
    %68 = vector.broadcast %c2_i32 : i32 to vector<8x128xi32>
    %69 = arith.cmpi eq, %47, %68 : vector<8x128xi32>
    %c0_i32_29 = arith.constant 0 : i32
    %70 = vector.shape_cast %41 : vector<8x1xi32> to vector<8x1xi32>
    %71 = vector.broadcast %70 : vector<8x1xi32> to vector<8x128xi32>
    %72 = vector.broadcast %c0_i32_29 : i32 to vector<8x128xi32>
    %73 = arith.select %69, %71, %72 : vector<8x128xi1>, vector<8x128xi32>
    %74 = arith.addi %67, %73 : vector<8x128xi32>
    %c3_i32 = arith.constant 3 : i32
    %75 = vector.broadcast %c3_i32 : i32 to vector<8x128xi32>
    %76 = arith.cmpi eq, %47, %75 : vector<8x128xi32>
    %c0_i32_30 = arith.constant 0 : i32
    %77 = vector.shape_cast %46 : vector<8x1xi32> to vector<8x1xi32>
    %78 = vector.broadcast %77 : vector<8x1xi32> to vector<8x128xi32>
    %79 = vector.broadcast %c0_i32_30 : i32 to vector<8x128xi32>
    %80 = arith.select %76, %78, %79 : vector<8x128xi1>, vector<8x128xi32>
    %81 = arith.addi %74, %80 : vector<8x128xi32>
    %c0_31 = arith.constant 0 : index
    %c0_32 = arith.constant 0 : index
    %82 = vector.load %arg4[%c0_31, %c0_32] : memref<8x128xi32, #tpu.memory_space<vmem>>, vector<8x128xi32>
    tpu.vector_store %arg4[%c0_31, %c0_32], %81 {strides = array<i32>} : memref<8x128xi32, #tpu.memory_space<vmem>>, vector<8x128xi32>,
    return
  }
  func.func @transform_0(%arg0: i32) -> (i32, i32, i32, i32) {
    %c0_i32 = arith.constant 0 : i32
    %c0_i32_0 = arith.constant 0 : i32
    %c0_i32_1 = arith.constant 0 : i32
    %c0_i32_2 = arith.constant 0 : i32
    return %arg0, %c0_i32, %c0_i32_0, %c0_i32_1 : i32, i32, i32, i32
  }
  func.func @transform_1(%arg0: i32) -> (i32, i32, i32) {
    %c0_i32 = arith.constant 0 : i32
    %c0_i32_0 = arith.constant 0 : i32
    %c0_i32_1 = arith.constant 0 : i32
    return %arg0, %c0_i32, %c0_i32_0 : i32, i32, i32
  }
  func.func @transform_2(%arg0: i32) -> (i32, i32) {
    %c0_i32 = arith.constant 0 : i32
    %c0_i32_0 = arith.constant 0 : i32
    return %arg0, %c0_i32 : i32, i32
  }
  func.func @transform_3(%arg0: i32) -> (i32, i32) {
    %c0_i32 = arith.constant 0 : i32
    %c0_i32_0 = arith.constant 0 : i32
    return %arg0, %c0_i32 : i32, i32
  }
}

</mosaic_0001>

<bundles_post_ra>
// kernel: tpu_custom_call.1
= control target key start
LH: loop header
LB: loop body
LE: loop exit
PB: predicated region body
PF: predicated region fallthrough
CT: control target
= control target key end

     0   :  { %9 = vsyncpa [#allocation3], 0  ;;  %s2714_s0 = inlined_call_operand.hbm [shape: f32[2,2,16,16], index: 0, kind: input, shape index: {}]   ;;  %s2715_s1 = inlined_call_operand.hbm [shape: s32[2,16,16], index: 1, kind: input, shape index: {}]   ;;  %s2716_s2 = inlined_call_operand.hbm [shape: f32[8,128], index: 2, kind: output, shape index: {0}]   ;;  %s2717_s3 = inlined_call_operand.hbm [shape: s32[8,128], index: 3, kind: output, shape index: {1}]  }
   0x1   :  { %10 = vsyncpa [#allocation6], 0 }
   0x2   :  { %11 = vsyncpa [#allocation4], 0 }
   0x3   :  { %12 = vsyncpa [#allocation9], 0 }
   0x4   :  { %17 = vsyncadd [#allocation3], 3072  ;;  %s1656_s12 = smov [#allocation2]   ;;  %s1560_s16 = scalar_lea.hbm %s2714_s0, 1024 }
   0x5   :  { %s18_s13 = sshll.u32 %s1656_s12, 4  ;;  %p1561_p0 = scmp.ne.s32.totalorder %s2714_s0, %s1560_s16  ;;  %s19_s13 = int_to_ptr.vmem [resolvable:$true] %s18_s13 }
   0x6   :  { %p1564_p1 = scmp.lt.u32.totalorder %s1560_s16, %s2714_s0 }
   0x8   :  { %p1566_p2 = pnand %p1564_p1, %p1561_p0 }
   0xa   :  { %1569 = shalt.err (!%p1566_p2)
}
   0xb   :  { %s1570_s21 = scalar_lea.vmem %s19_s13, 1024  ;;  %s1574_s22 = scalar_lea.vmem %s19_s13, 4096 }
   0xc   :  { %p1571_p3 = scmp.ne.s32.totalorder %s19_s13, %s1570_s21  ;;  %p1575_p4 = scmp.lt.s32.totalorder %s19_s13, %s19_s13 }
   0xd   :  { %p1576_p5 = scmp.lt.s32.totalorder %s1574_s22, %s1570_s21 }
   0xf   :  { %p1577_p6 = por %p1576_p5, %p1575_p4 }
  0x11   :  { %p1578_p7 = pnand %p1577_p6, %p1571_p3 }
  0x13   :  { %1581 = shalt.err (!%p1578_p7)
}
  0x14   :  { %s1657_s23 = smov 128   ;;  %s1658_s24 = smov 8  }
  0x15   :  { %24 = dma.hbm_to_vmem [thread:$0]  %s2714_s0, 1024, %s19_s13, [#allocation3], %s1657_s23, %s1657_s23, %s1658_s24  }
  0x16   :  { %29 = vsyncadd [#allocation6], 1536  ;;  %s1659_s27 = smov [#allocation5]   ;;  %s1582_s4 = scalar_lea.hbm %s2715_s1, 512 }
  0x17   :  { %s30_s28 = sshll.u32 %s1659_s27, 4  ;;  %p1583_p8 = scmp.ne.s32.totalorder %s2715_s1, %s1582_s4  ;;  %s31_s28 = int_to_ptr.vmem [resolvable:$true] %s30_s28 }
  0x18   :  { %p1586_p9 = scmp.lt.u32.totalorder %s1582_s4, %s2715_s1 }
  0x1a   :  { %p1588_p10 = pnand %p1586_p9, %p1583_p8 }
  0x1c   :  { %1591 = shalt.err (!%p1588_p10)
}
  0x1d   :  { %s1592_s9 = scalar_lea.vmem %s31_s28, 512  ;;  %s1596_s0 = scalar_lea.vmem %s31_s28, 2048 }
  0x1e   :  { %p1593_p11 = scmp.ne.s32.totalorder %s31_s28, %s1592_s9  ;;  %p1597_p12 = scmp.lt.s32.totalorder %s31_s28, %s31_s28 }
  0x1f   :  { %p1598_p13 = scmp.lt.s32.totalorder %s1596_s0, %s1592_s9 }
  0x21   :  { %p1599_p0 = por %p1598_p13, %p1597_p12 }
  0x23   :  { %p1600_p1 = pnand %p1599_p0, %p1593_p11 }
  0x25   :  { %1603 = shalt.err (!%p1600_p1)
}
  0x26   :  { %36 = dma.hbm_to_vmem [thread:$0]  %s2715_s1, 512, %s31_s28, [#allocation6], %s1657_s23, %s1657_s23, %s1658_s24  }
  0x27   :  { %1648 = dma.done.wait [#allocation3], 4096  }
  0x28   :  { %1649 = vsyncadd [#allocation3], 4294963200 }
  0x29   :  { %1650 = dma.done.wait [#allocation6], 2048  }
  0x2a   :  { %1651 = vsyncadd [#allocation6], 4294965248  ;;  %v43_v0 = vld [vmem:[#allocation2] sm:$0xff]  ;;  %v60_v1 = vld [vmem:[#allocation2 + $0x10] sm:$0xff]  ;;  %vm316_vm3 = vcmask 130048   ;;  %v2723_v18 = vmov 0  }
  0x2b   :  { %v1707_v2 = vld [vmem:[#allocation5] sm:$0xff]  ;;  %v1710_v3 = vsub.f32 %v60_v1, %v43_v0  ;;  %v44_v4 = vld [vmem:[#allocation2 + $0x8] sm:$0xff]  ;;  %v61_v5 = vld [vmem:[#allocation2 + $0x18] sm:$0xff]  ;;  %s1661_s1 = smov [#allocation7]  }
  0x2c   :  { %vm92_vm0 = vcmp.eq.s32.totalorder %v1707_v2, 1  ;;  %v1712_v6 = vld [vmem:[#allocation5 + $0x8] sm:$0xff]  ;;  %v1715_v7 = vsub.f32 %v61_v5, %v44_v4  ;;  %v45_v8 = vld [vmem:[#allocation2 + $0x20] sm:$0xff]  ;;  %v62_v9 = vld [vmem:[#allocation2 + $0x30] sm:$0xff]  ;;  %s1465_s12 = sshll.u32 %s1661_s1, 4  ;;  %s1466_s12 = int_to_ptr.vmem [resolvable:$true] %s1465_s12 }
  0x2d   :  { %vm93_vm1 = vcmp.eq.s32.totalorder %v1712_v6, 1  ;;  %v1717_v10 = vld [vmem:[#allocation5 + $0x10] sm:$0xff]  ;;  %vm124_vm2 = vcmp.gt.f32.partialorder %v1710_v3, 0.0  ;;  %v1720_v11 = vsub.f32 %v62_v9, %v45_v8  ;;  %v46_v12 = vld [vmem:[#allocation2 + $0x28] sm:$0xff]  ;;  %v63_v13 = vld [vmem:[#allocation2 + $0x38] sm:$0xff]  ;;  %v140_v20 = vsub.f32 0.0, %v1710_v3  ;;  %p1609_p3 = scmp.lt.s32.totalorder %s1466_s12, %s1466_s12 }
  0x2e   :  { %v1722_v14 = vld [vmem:[#allocation5 + $0x18] sm:$0xff]  ;;  %vm476_vm4 = vmand %vm124_vm2, %vm92_vm0  ;;  %vm125_vm5 = vcmp.gt.f32.partialorder %v1715_v7, 0.0  ;;  %vm2731_vm6 = vcmp.eq.s32.totalorder %v1717_v10, 1  ;;  %v1730_v15 = vsub.f32 %v63_v13, %v46_v12  ;;  %v47_v16 = vld [vmem:[#allocation2 + $0x40] sm:$0xff]  ;;  %v141_v36 = vsub.f32 0.0, %v1715_v7  ;;  %s1604_s13 = scalar_lea.vmem %s1466_s12, 128 }
  0x2f   :  { %v64_v17 = vld [vmem:[#allocation2 + $0x50] sm:$0xff]  ;;  %v492_v19 = vsel %vm476_vm4, 1, %v2723_v18  ;;  %vm477_vm7 = vmand %vm125_vm5, %vm93_vm1  ;;  %vm126_vm8 = vcmp.gt.f32.partialorder %v1720_v11, 0.0  ;;  %vm95_vm9 = vcmp.eq.s32.totalorder %v1722_v14, 1  ;;  %v1755_v28 = vld [vmem:[#allocation5 + $0x20] sm:$0xff]  ;;  %v1762_v35 = vsel %vm92_vm0, %v140_v20, %v1710_v3  ;;  %p1605_p2 = scmp.ne.s32.totalorder %s1466_s12, %s1604_s13  ;;  %p1610_p4 = scmp.lt.s32.totalorder %s1604_s13, %s1604_s13 }
  0x30   :  { %v508_v21 = vsel %vm316_vm3, %v492_v19, 0  ;;  %v493_v22 = vsel %vm477_vm7, 1, %v2723_v18  ;;  %vm478_vm10 = vmand %vm126_vm8, %vm2731_vm6  ;;  %vm127_vm11 = vcmp.gt.f32.partialorder %v1730_v15, 0.0  ;;  %v1747_v23 = vsub.f32 %v64_v17, %v47_v16  ;;  %v48_v56 = vld [vmem:[#allocation2 + $0x48] sm:$0xff]  ;;  %v65_v57 = vld [vmem:[#allocation2 + $0x58] sm:$0xff] }
  0x31   :  { %v510_v24 = vshrl.u32 %v508_v21, 16  ;;  %v509_v25 = vand.u32 65535, %v508_v21  ;;  %v521_v26 = vsel %vm316_vm3, %v493_v22, 0  ;;  %v494_v27 = vsel %vm478_vm10, 1, %v2723_v18  ;;  %vm479_vm12 = vmand %vm127_vm11, %vm95_vm9  ;;  %v1789_v62 = vld [vmem:[#allocation5 + $0x28] sm:$0xff]  ;;  %v49_v63 = vld [vmem:[#allocation2 + $0x60] sm:$0xff]  ;;  %p1611_p5 = por %p1610_p4, %p1609_p3 }
  0x32   :  { %v523_v29 = vshrl.u32 %v521_v26, 16  ;;  %v522_v30 = vand.u32 65535, %v521_v26  ;;  %v534_v31 = vsel %vm316_vm3, %v494_v27, 0  ;;  %v495_v32 = vsel %vm479_vm12, 1, %v2723_v18  ;;  %v66_v8 = vld [vmem:[#allocation2 + $0x70] sm:$0xff]  ;;  %v50_v17 = vld [vmem:[#allocation2 + $0x68] sm:$0xff] }
  0x33   :  { %v512_v33 = vcvt.s32.f32 %v510_v24  ;;  %v511_v34 = vcvt.s32.f32 %v509_v25  ;;  %v536_v37 = vshrl.u32 %v534_v31, 16  ;;  %v547_v38 = vsel %vm316_vm3, %v495_v32, 0  ;;  %v1792_v9 = vld [vmem:[#allocation5 + $0x30] sm:$0xff]  ;;  %v67_v19 = vld [vmem:[#allocation2 + $0x78] sm:$0xff]  ;;  %p1612_p6 = pnand %p1611_p5, %p1605_p2 }
  0x34   :  { %vm2718_vm13 = vcmp.eq.s32.totalorder %v1755_v28, 1  ;;  %vm2721_vm14 = vcmp.gt.f32.partialorder %v1747_v23, 0.0  ;;  %v525_v39 = vcvt.s32.f32 %v523_v29  ;;  %v524_v40 = vcvt.s32.f32 %v522_v30  ;;  %v1801_v20 = vld [vmem:[#allocation5 + $0x38] sm:$0xff]  ;;  %v68_v32 = vld [vmem:[#allocation2 + $0x90] sm:$0xff] }
  0x35   :  { %515 = vadd.xlane.f32.xlu0 %v512_v33  ;;  %513 = vadd.xlane.f32.xlu1 %v511_v34  ;;  %v535_v41 = vand.u32 65535, %v534_v31  ;;  %v549_v42 = vshrl.u32 %v547_v38, 16  ;;  %vm480_vm15 = vmand %vm2721_vm14, %vm2718_vm13  ;;  %v548_v43 = vand.u32 65535, %v547_v38  ;;  %v188_v45 = vand.u32 2147483647, %v1762_v35  ;;  %v51_v31 = vld [vmem:[#allocation2 + $0x80] sm:$0xff] }
  0x36   :  { %v496_v44 = vsel %vm480_vm15, 1, %v2723_v18  ;;  %v142_v46 = vsub.f32 0.0, %v1720_v11  ;;  %v1779_v48 = vsel %vm93_vm1, %v141_v36, %v1715_v7  ;;  %v538_v52 = vcvt.s32.f32 %v536_v37 }
  0x37   :  { %v560_v47 = vsel %vm316_vm3, %v496_v44, 0  ;;  %v204_v50 = vsub.f32 0.0, %v188_v45  ;;  %v537_v53 = vcvt.s32.f32 %v535_v41  ;;  %v189_v55 = vand.u32 2147483647, %v1779_v48  ;;  %v1826_v41 = vld [vmem:[#allocation5 + $0x40] sm:$0xff]  ;;  %v52_v45 = vld [vmem:[#allocation2 + $0x88] sm:$0xff] }
  0x38   :  { %v562_v49 = vshrl.u32 %v560_v47, 16  ;;  %v1784_v51 = vsel %vm2731_vm6, %v142_v46, %v1720_v11  ;;  %v551_v58 = vcvt.s32.f32 %v549_v42  ;;  %v550_v59 = vcvt.s32.f32 %v548_v43  ;;  %v69_v46 = vld [vmem:[#allocation2 + $0x98] sm:$0xff] }
  0x39   :  { %528 = vadd.xlane.f32.xlu0 %v525_v39  ;;  %526 = vadd.xlane.f32.xlu1 %v524_v40  ;;  %v190_v54 = vand.u32 2147483647, %v1784_v51  ;;  %v220_v60 = vmul.f32 1.442695, %v204_v50  ;;  %v143_v61 = vsub.f32 0.0, %v1730_v15  ;;  %v561_v0 = vand.u32 65535, %v560_v47 }
  0x3a   :  { %v205_v4 = vsub.f32 0.0, %v189_v55  ;;  %v144_v5 = vsub.f32 0.0, %v1747_v23  ;;  %v564_v12 = vcvt.s32.f32 %v562_v49  ;;  %v1799_v16 = vsub.f32 %v65_v57, %v48_v56 }
  0x3b   :  { %v206_v1 = vsub.f32 0.0, %v190_v54  ;;  %1496 = vpow2.f32 %v220_v60  ;;  %v1797_v13 = vsel %vm95_vm9, %v143_v61, %v1730_v15  ;;  %vm2732_vm4 = vcmp.eq.s32.totalorder %v1789_v62, 1  ;;  %v70_v54 = vld [vmem:[#allocation2 + $0xb0] sm:$0xff] }
  0x3c   :  { %v222_v22 = vmul.f32 1.442695, %v205_v4  ;;  %v1806_v24 = vsel %vm2718_vm13, %v144_v5, %v1747_v23  ;;  %v191_v25 = vand.u32 2147483647, %v1797_v13  ;;  %v145_v27 = vsub.f32 0.0, %v1799_v16 }
  0x3d   :  { %541 = vadd.xlane.f32.xlu0 %v538_v52  ;;  %539 = vadd.xlane.f32.xlu1 %v537_v53  ;;  %v224_v21 = vmul.f32 1.442695, %v206_v1  ;;  %v192_v26 = vand.u32 2147483647, %v1806_v24  ;;  %vm98_vm7 = vcmp.eq.s32.totalorder %v1792_v9, 1  ;;  %v1813_v29 = vsub.f32 %v66_v8, %v49_v63  ;;  %v1840_v52 = vld [vmem:[#allocation5 + $0x48] sm:$0xff] }
  0x3e   :  { %vm99_vm10 = vcmp.eq.s32.totalorder %v1801_v20, 1  ;;  %v1816_v30 = vsub.f32 %v67_v19, %v50_v17  ;;  %v207_v33 = vsub.f32 0.0, %v191_v25  ;;  %v1821_v36 = vsel %vm2732_vm4, %v145_v27, %v1799_v16  ;;  %v53_v53 = vld [vmem:[#allocation2 + $0xa0] sm:$0xff]  ;;  %v1849_v63 = vld [vmem:[#allocation5 + $0x50] sm:$0xff]  ;;  %v54_v25 = vld [vmem:[#allocation2 + $0xa8] sm:$0xff] }
  0x3f   :  { %1498 = vpow2.f32 %v224_v21  ;;  %v208_v34 = vsub.f32 0.0, %v192_v26  ;;  %v563_v37 = vcvt.s32.f32 %v561_v0  ;;  %v193_v38 = vand.u32 2147483647, %v1821_v36  ;;  %v71_v26 = vld [vmem:[#allocation2 + $0xb8] sm:$0xff] }
  0x40   :  { %1500 = vpow2.f32 %v222_v22  ;;  %v146_v39 = vsub.f32 0.0, %v1813_v29  ;;  %v147_v40 = vsub.f32 0.0, %v1816_v30  ;;  %v226_v42 = vmul.f32 1.442695, %v207_v33 }
  0x41   :  { %554 = vadd.xlane.f32.xlu0 %v551_v58  ;;  %552 = vadd.xlane.f32.xlu1 %v550_v59  ;;  %v228_v43 = vmul.f32 1.442695, %v208_v34  ;;  %v1828_v44 = vsub.f32 %v68_v32, %v51_v31  ;;  %v209_v47 = vsub.f32 0.0, %v193_v38  ;;  %vm2719_vm12 = vcmp.eq.s32.totalorder %v1826_v41, 1  ;;  %v1867_v34 = vld [vmem:[#allocation5 + $0x58] sm:$0xff] }
  0x42   :  { %v1833_v49 = vsel %vm98_vm7, %v146_v39, %v1813_v29  ;;  %v1838_v50 = vsel %vm99_vm10, %v147_v40, %v1816_v30  ;;  %1502 = vpow2.f32 %v226_v42  ;;  %vm101_vm15 = vcmp.eq.s32.totalorder %v1840_v52, 1  ;;  %v55_v40 = vld [vmem:[#allocation2 + $0xc0] sm:$0xff]  ;;  %v72_v42 = vld [vmem:[#allocation2 + $0xd0] sm:$0xff] }
  0x43   :  { %v194_v55 = vand.u32 2147483647, %v1833_v49  ;;  %1504 = vpow2.f32 %v228_v43  ;;  %v230_v56 = vmul.f32 1.442695, %v209_v47  ;;  %v195_v57 = vand.u32 2147483647, %v1838_v50 }
  0x44   :  { %v148_v58 = vsub.f32 0.0, %v1828_v44  ;;  %v1847_v61 = vsub.f32 %v69_v46, %v52_v45  ;;  %v1851_v0 = vsub.f32 %v70_v54, %v53_v53  ;;  %vm2720_vm13 = vcmp.eq.s32.totalorder %v1849_v63, 1  ;;  %v1878_v47 = vld [vmem:[#allocation5 + $0x60] sm:$0xff]  ;;  %v56_v54 = vld [vmem:[#allocation2 + $0xc8] sm:$0xff] }
  0x45   :  { %567 = vadd.xlane.f32.xlu0 %v564_v12  ;;  %565 = vadd.xlane.f32.xlu1 %v563_v37  ;;  %v1497_v59 = vpop.eup %1496  ;;  %v210_v60 = vsub.f32 0.0, %v194_v55  ;;  %1506 = vpow2.f32 %v230_v56  ;;  %v211_v4 = vsub.f32 0.0, %v195_v57  ;;  %v172_v37 = vmax.f32 %v1762_v35, 0.0  ;;  %2733 = vst [vmem:[#allocation14_spill] sm:$0xff] %v1878_v47  ;;  %v73_v55 = vld [vmem:[#allocation2 + $0xd8] sm:$0xff] }
  0x46   :  { %v252_v1 = vadd.f32 1.0, %v1497_v59  ;;  %v1856_v5 = vsel %vm2719_vm12, %v148_v58, %v1828_v44  ;;  %v149_v17 = vsub.f32 0.0, %v1847_v61  ;;  %v150_v22 = vsub.f32 0.0, %v1851_v0 }
  0x47   :  { %v232_v8 = vmul.f32 1.442695, %v210_v60  ;;  %v196_v12 = vand.u32 2147483647, %v1856_v5  ;;  %v234_v21 = vmul.f32 1.442695, %v211_v4  ;;  %v1876_v46 = vsub.f32 %v71_v26, %v54_v25 }
  0x48   :  { %1508 = vlog2.f32 %v252_v1  ;;  %v1865_v33 = vsel %vm101_vm15, %v149_v17, %v1847_v61  ;;  %v1874_v45 = vsel %vm2720_vm13, %v150_v22, %v1851_v0  ;;  %vm2730_vm12 = vcmp.eq.s32.totalorder %v1867_v34, 1  ;;  %v1886_v60 = vld [vmem:[#allocation5 + $0x68] sm:$0xff] }
  0x49   :  { %v1499_v19 = vpop.eup %1498  ;;  %1510 = vpow2.f32 %v232_v8  ;;  %v212_v32 = vsub.f32 0.0, %v196_v12  ;;  %v197_v39 = vand.u32 2147483647, %v1865_v33  ;;  %v198_v35 = vand.u32 2147483647, %v1874_v45 }
  0x4a   :  { %v1501_v27 = vpop.eup %1500  ;;  %v254_v31 = vadd.f32 1.0, %v1499_v19  ;;  %1512 = vpow2.f32 %v234_v21  ;;  %v174_v57 = vmax.f32 %v1784_v51, 0.0  ;;  %v151_v58 = vsub.f32 0.0, %v1876_v46 }
  0x4b   :  { %v253_v38 = vadd.f32 1.0, %v1501_v27  ;;  %v236_v43 = vmul.f32 1.442695, %v212_v32  ;;  %v213_v53 = vsub.f32 0.0, %v197_v39  ;;  %v1884_v59 = vsub.f32 %v72_v42, %v55_v40 }
  0x4c   :  { %1514 = vlog2.f32 %v254_v31  ;;  %v1503_v56 = vpop.eup %1502  ;;  %v214_v12 = vsub.f32 0.0, %v198_v35  ;;  %vm2722_vm13 = vcmp.eq.s32.totalorder %v1878_v47, 1  ;;  %v1892_v19 = vsel %vm2730_vm12, %v151_v58, %v1876_v46  ;;  %v74_v58 = vld [vmem:[#allocation2 + $0xf0] sm:$0xff]  ;;  %v1921_v47 = vld [vmem:[#allocation5 + $0x78] sm:$0xff] }
  0x4d   :  { %1516 = vlog2.f32 %v253_v38  ;;  %v1505_v1 = vpop.eup %1504  ;;  %v255_v4 = vadd.f32 1.0, %v1503_v56  ;;  %v238_v8 = vmul.f32 1.442695, %v213_v53  ;;  %v152_v51 = vsub.f32 0.0, %v1884_v59  ;;  %v57_v56 = vld [vmem:[#allocation2 + $0xe0] sm:$0xff] }
  0x4e   :  { %1518 = vpow2.f32 %v236_v43  ;;  %v256_v17 = vadd.f32 1.0, %v1505_v1  ;;  %v1895_v21 = vsub.f32 %v73_v55, %v56_v54  ;;  %v240_v25 = vmul.f32 1.442695, %v214_v12  ;;  %v1907_v43 = vld [vmem:[#allocation5 + $0x70] sm:$0xff] }
  0x4f   :  { %v1507_v22 = vpop.eup %1506  ;;  %1520 = vlog2.f32 %v255_v4  ;;  %v199_v26 = vand.u32 2147483647, %v1892_v19  ;;  %vm2727_vm14 = vcmp.eq.s32.totalorder %v1886_v60, 1  ;;  %v1902_v31 = vsel %vm2722_vm13, %v152_v51, %v1884_v59 }
  0x50   :  { %1522 = vlog2.f32 %v256_v17  ;;  %v257_v27 = vadd.f32 1.0, %v1507_v22  ;;  %v153_v32 = vsub.f32 0.0, %v1895_v21  ;;  %v173_v39 = vmax.f32 %v1779_v48, 0.0 }
  0x51   :  { %1524 = vpow2.f32 %v238_v8  ;;  %v215_v40 = vsub.f32 0.0, %v199_v26  ;;  %v200_v42 = vand.u32 2147483647, %v1902_v31  ;;  %v175_v54 = vmax.f32 %v1797_v13, 0.0 }
  0x52   :  { %v1509_v38 = vpop.eup %1508  ;;  %1526 = vlog2.f32 %v257_v27  ;;  %v1913_v55 = vsel %vm2727_vm14, %v153_v32, %v1895_v21  ;;  %vm2728_vm13 = vcmp.eq.s32.totalorder %v1907_v43, 1  ;;  %v1917_v32 = vsub.f32 %v74_v58, %v57_v56 }
  0x53   :  { %v1511_v53 = vpop.eup %1510  ;;  %v269_v35 = vmul.f32 0.6931472, %v1509_v38  ;;  %1528 = vpow2.f32 %v240_v25  ;;  %v242_v4 = vmul.f32 1.442695, %v215_v40  ;;  %v216_v8 = vsub.f32 0.0, %v200_v42  ;;  %v58_v40 = vld [vmem:[#allocation2 + $0xe8] sm:$0xff] }
  0x54   :  { %v1513_v1 = vpop.eup %1512  ;;  %v258_v48 = vadd.f32 1.0, %v1511_v53  ;;  %v201_v22 = vand.u32 2147483647, %v1913_v55  ;;  %v75_v42 = vld [vmem:[#allocation2 + $0xf8] sm:$0xff]  ;;  %v176_v56 = vmax.f32 %v1806_v24, 0.0  ;;  %vm2729_vm14 = vcmp.eq.s32.totalorder %v1921_v47, 1 }
  0x55   :  { %v300_v17 = vadd.f32 %v269_v35, %v172_v37  ;;  %v259_v51 = vadd.f32 1.0, %v1513_v1  ;;  %v244_v27 = vmul.f32 1.442695, %v216_v8  ;;  %v154_v1 = vsub.f32 0.0, %v1917_v32 }
  0x56   :  { %v1515_v12 = vpop.eup %1514  ;;  %1530 = vlog2.f32 %v258_v48  ;;  %v217_v25 = vsub.f32 0.0, %v201_v22  ;;  %v177_v22 = vmax.f32 %v1821_v36, 0.0  ;;  %vm131_vm12 = vcmp.gt.f32.partialorder %v1816_v30, 0.0 }
  0x57   :  { %v1517_v13 = vpop.eup %1516  ;;  %v273_v26 = vmul.f32 0.6931472, %v1515_v12  ;;  %v317_v18 = vsel %vm316_vm3, %v300_v17, 0.0  ;;  %1532 = vlog2.f32 %v259_v51  ;;  %vm130_vm6 = vcmp.gt.f32.partialorder %v1813_v29, 0.0 }
  0x58   :  { %v1519_v38 = vpop.eup %1518  ;;  %v271_v53 = vmul.f32 0.6931472, %v1517_v13  ;;  %318 = vadd.xlane.f32.xlu0 %v317_v18  ;;  %1534 = vpow2.f32 %v242_v4  ;;  %v246_v58 = vmul.f32 1.442695, %v217_v25  ;;  %v1928_v18 = vsel %vm2728_vm13, %v154_v1, %v1917_v32 }
  0x59   :  { %v302_v37 = vadd.f32 %v273_v26, %v174_v57  ;;  %v260_v35 = vadd.f32 1.0, %v1519_v38  ;;  %1536 = vpow2.f32 %v244_v27  ;;  %v1521_v8 = vpop.eup %1520  ;;  %v1930_v57 = vsub.f32 %v75_v42, %v58_v40 }
  0x5a   :  { %v301_v48 = vadd.f32 %v271_v53, %v173_v39  ;;  %v1523_v4 = vpop.eup %1522  ;;  %v275_v39 = vmul.f32 0.6931472, %v1521_v8  ;;  %v202_v13 = vand.u32 2147483647, %v1928_v18  ;;  %v178_v53 = vmax.f32 %v1833_v49, 0.0 }
  0x5b   :  { %v323_v12 = vsel %vm316_vm3, %v302_v37, 0.0  ;;  %1538 = vlog2.f32 %v260_v35  ;;  %v1525_v24 = vpop.eup %1524  ;;  %v277_v51 = vmul.f32 0.6931472, %v1523_v4  ;;  %v155_v26 = vsub.f32 0.0, %v1930_v57 }
  0x5c   :  { %324 = vadd.xlane.f32.xlu1 %v323_v12  ;;  %v320_v17 = vsel %vm316_vm3, %v301_v48, 0.0  ;;  %1540 = vpow2.f32 %v246_v58  ;;  %v1527_v27 = vpop.eup %1526  ;;  %v303_v38 = vadd.f32 %v275_v39, %v175_v54  ;;  %v261_v25 = vadd.f32 1.0, %v1525_v24 }
  0x5d   :  { %321 = vadd.xlane.f32.xlu0 %v320_v17  ;;  %v1529_v40 = vpop.eup %1528  ;;  %v304_v42 = vadd.f32 %v277_v51, %v176_v56  ;;  %v279_v37 = vmul.f32 0.6931472, %v1527_v27  ;;  %v218_v35 = vsub.f32 0.0, %v202_v13  ;;  %v1941_v1 = vsel %vm2729_vm14, %v155_v26, %v1930_v57 }
  0x5e   :  { %v326_v36 = vsel %vm316_vm3, %v303_v38, 0.0  ;;  %v179_v48 = vmax.f32 %v1838_v50, 0.0  ;;  %1542 = vlog2.f32 %v261_v25  ;;  %v262_v58 = vadd.f32 1.0, %v1529_v40 }
  0x5f   :  { %v329_v49 = vsel %vm316_vm3, %v304_v42, 0.0  ;;  %v305_v54 = vadd.f32 %v279_v37, %v177_v22  ;;  %v248_v12 = vmul.f32 1.442695, %v218_v35  ;;  %v203_v56 = vand.u32 2147483647, %v1941_v1 }
  0x60   :  { %v1531_v8 = vpop.eup %1530  ;;  %327 = vadd.xlane.f32.xlu1 %v326_v36  ;;  %1544 = vlog2.f32 %v262_v58  ;;  %v180_v27 = vmax.f32 %v1856_v5, 0.0  ;;  %v181_v5 = vmax.f32 %v1865_v33, 0.0  ;;  %v184_v33 = vmax.f32 %v1902_v31, 0.0 }
  0x61   :  { %v1533_v4 = vpop.eup %1532  ;;  %330 = vadd.xlane.f32.xlu0 %v329_v49  ;;  %v281_v17 = vmul.f32 0.6931472, %v1531_v8  ;;  %v332_v24 = vsel %vm316_vm3, %v305_v54, 0.0  ;;  %1546 = vpow2.f32 %v248_v12  ;;  %v219_v50 = vsub.f32 0.0, %v203_v56 }
  0x62   :  { %v1535_v39 = vpop.eup %1534  ;;  %v283_v51 = vmul.f32 0.6931472, %v1533_v4  ;;  %v182_v12 = vmax.f32 %v1874_v45, 0.0  ;;  %vm129_vm13 = vcmp.gt.f32.partialorder %v1799_v16, 0.0 }
  0x63   :  { %v1537_v13 = vpop.eup %1536  ;;  %v306_v26 = vadd.f32 %v281_v17, %v178_v53  ;;  %v263_v38 = vadd.f32 1.0, %v1535_v39  ;;  %v250_v42 = vmul.f32 1.442695, %v219_v50  ;;  %vm481_vm14 = vmand %vm129_vm13, %vm2732_vm4 }
  0x64   :  { %333 = vadd.xlane.f32.xlu1 %v332_v24  ;;  %v307_v22 = vadd.f32 %v283_v51, %v179_v48  ;;  %v264_v40 = vadd.f32 1.0, %v1537_v13  ;;  %v183_v13 = vmax.f32 %v1892_v19, 0.0  ;;  %vm1974_vm4 = vmand %vm131_vm12, %vm99_vm10 }
  0x65   :  { %v1539_v25 = vpop.eup %1538  ;;  %v335_v35 = vsel %vm316_vm3, %v306_v26, 0.0  ;;  %1548 = vlog2.f32 %v263_v38 }
  0x66   :  { %v1541_v37 = vpop.eup %1540  ;;  %v285_v36 = vmul.f32 0.6931472, %v1539_v25  ;;  %336 = vadd.xlane.f32.xlu0 %v335_v35  ;;  %v338_v58 = vsel %vm316_vm3, %v307_v22, 0.0  ;;  %1550 = vlog2.f32 %v264_v40  ;;  %v185_v40 = vmax.f32 %v1913_v55, 0.0 }
  0x67   :  { %v265_v8 = vadd.f32 1.0, %v1541_v37  ;;  %1552 = vpow2.f32 %v250_v42 }
  0x68   :  { %v308_v49 = vadd.f32 %v285_v36, %v180_v27  ;;  %339 = vadd.xlane.f32.xlu1 %v338_v58  ;;  %v1543_v53 = vpop.eup %1542 }
  0x69   :  { %1554 = vlog2.f32 %v265_v8  ;;  %v287_v54 = vmul.f32 0.6931472, %v1543_v53 }
  0x6a   :  { %v341_v48 = vsel %vm316_vm3, %v308_v49, 0.0  ;;  %v1545_v56 = vpop.eup %1544  ;;  %v2734_v49 = vmov 0  }
  0x6b   :  { %342 = vadd.xlane.f32.xlu0 %v341_v48  ;;  %v1547_v4 = vpop.eup %1546  ;;  %v309_v17 = vadd.f32 %v287_v54, %v181_v5  ;;  %v289_v39 = vmul.f32 0.6931472, %v1545_v56  ;;  %v497_v5 = vsel %vm481_vm14, 1, %v2734_v49  ;;  %v186_v48 = vmax.f32 %v1928_v18, 0.0  ;;  %vm1984_vm14 = vmand %vm130_vm6, %vm98_vm7 }
  0x6c   :  { %v266_v24 = vadd.f32 1.0, %v1547_v4  ;;  %v573_v54 = vsel %vm316_vm3, %v497_v5, 0  ;;  %v809_v4 = vsel %vm125_vm5, 1, %v2734_v49  ;;  %v808_v7 = vsel %vm124_vm2, 1, %v2734_v49 }
  0x6d   :  { %v344_v51 = vsel %vm316_vm3, %v309_v17, 0.0  ;;  %v310_v50 = vadd.f32 %v289_v39, %v182_v12  ;;  %v575_v39 = vshrl.u32 %v573_v54, 16  ;;  %v1992_v18 = vsel %vm316_vm3, %v809_v4, 0 }
  0x6e   :  { %345 = vadd.xlane.f32.xlu1 %v344_v51  ;;  %1556 = vlog2.f32 %v266_v24  ;;  %v187_v51 = vmax.f32 %v1941_v1, 0.0  ;;  %v2007_v15 = vsel %vm316_vm3, %v808_v7, 0  ;;  %v810_v3 = vsel %vm126_vm8, 1, %v2734_v49 }
  0x6f   :  { %v1549_v26 = vpop.eup %1548  ;;  %v347_v45 = vsel %vm316_vm3, %v310_v50, 0.0  ;;  %v811_v50 = vsel %vm127_vm11, 1, %v2734_v49  ;;  %vm133_vm2 = vcmp.gt.f32.partialorder %v1847_v61, 0.0  ;;  %v826_v11 = vshrl.u32 %v2007_v15, 16 }
  0x70   :  { %v1551_v27 = vpop.eup %1550  ;;  %v291_v38 = vmul.f32 0.6931472, %v1549_v26  ;;  %348 = vadd.xlane.f32.xlu0 %v347_v45  ;;  %v839_v45 = vshrl.u32 %v1992_v18, 16  ;;  %vm2022_vm5 = vmand %vm133_vm2, %vm101_vm15  ;;  %v813_v14 = vsel %vm129_vm13, 1, %v2734_v49  ;;  %vm2743_vm8 = vcmp.gt.f32.partialorder %v1747_v23, 0.0 }
  0x71   :  { %v1553_v25 = vpop.eup %1552  ;;  %v293_v22 = vmul.f32 0.6931472, %v1551_v27  ;;  %v577_v27 = vcvt.s32.f32 %v575_v39  ;;  %v498_v53 = vsel %vm1984_vm14, 1, %v2734_v49  ;;  %v1130_v20 = vsel %vm98_vm7, 1, %v2734_v49 }
  0x72   :  { %v311_v37 = vadd.f32 %v291_v38, %v183_v13  ;;  %v267_v35 = vadd.f32 1.0, %v1553_v25  ;;  %v574_v38 = vand.u32 65535, %v573_v54  ;;  %v2004_v25 = vsel %vm316_vm3, %v811_v50, 0 }
  0x73   :  { %v1555_v42 = vpop.eup %1554  ;;  %v312_v19 = vadd.f32 %v293_v22, %v184_v33  ;;  %v1125_v22 = vsel %vm93_vm1, 1, %v2734_v49  ;;  %vm2742_vm1 = vcmp.eq.s32.totalorder %v1789_v62, 1  ;;  %v499_v62 = vsel %vm1974_vm4, 1, %v2734_v49 }
  0x74   :  { %v295_v31 = vmul.f32 0.6931472, %v1555_v42  ;;  %v350_v36 = vsel %vm316_vm3, %v311_v37, 0.0  ;;  %1558 = vlog2.f32 %v267_v35  ;;  %v841_v42 = vcvt.s32.f32 %v839_v45 }
  0x75   :  { %351 = vadd.xlane.f32.xlu1 %v350_v36  ;;  %v353_v58 = vsel %vm316_vm3, %v312_v19, 0.0  ;;  %v865_v37 = vshrl.u32 %v2004_v25, 16  ;;  %v576_v6 = vcvt.s32.f32 %v574_v38  ;;  %v2028_v19 = vsel %vm316_vm3, %v1125_v22, 0 }
  0x76   :  { %v313_v8 = vadd.f32 %v295_v31, %v185_v40  ;;  %354 = vadd.xlane.f32.xlu0 %v353_v58  ;;  %v2031_v31 = vsel %vm316_vm3, %v810_v3, 0  ;;  %v1127_v36 = vsel %vm95_vm9, 1, %v2734_v49  ;;  %v1124_v58 = vsel %vm92_vm0, 1, %v2734_v49 }
  0x77   :  { %v1155_v5 = vshrl.u32 %v2028_v19, 16  ;;  %v2042_v54 = vsel %vm316_vm3, %v1127_v36, 0  ;;  %vm2741_vm0 = vcmp.eq.s32.totalorder %v1717_v10, 1  ;;  %v1129_v16 = vsel %vm2742_vm1, 1, %v2734_v49 }
  0x78   :  { %v356_v55 = vsel %vm316_vm3, %v313_v8, 0.0  ;;  %v1557_v56 = vpop.eup %1556  ;;  %v867_v8 = vcvt.s32.f32 %v865_v37  ;;  %v1126_v2 = vsel %vm2741_vm0, 1, %v2734_v49  ;;  %v812_v10 = vsel %vm2743_vm8, 1, %v2734_v49 }
  0x79   :  { %357 = vadd.xlane.f32.xlu1 %v356_v55  ;;  %v297_v17 = vmul.f32 0.6931472, %v1557_v56  ;;  %v828_v55 = vcvt.s32.f32 %v826_v11  ;;  %v2045_v56 = vsel %vm316_vm3, %v1124_v58, 0  ;;  %v1157_v4 = vcvt.s32.f32 %v1155_v5 }
  0x7a   :  { %v2059_v50 = vsel %vm316_vm3, %v1126_v2, 0  ;;  %v2073_v45 = vsel %vm316_vm3, %v812_v10, 0  ;;  %vm2744_vm9 = vcmp.eq.s32.totalorder %v1755_v28, 1  ;;  %v2095_v36 = vsel %vm316_vm3, %v498_v53, 0 }
  0x7b   :  { %v314_v24 = vadd.f32 %v297_v17, %v186_v48  ;;  %v852_v48 = vshrl.u32 %v2031_v31, 16  ;;  %v1181_v17 = vshrl.u32 %v2042_v54, 16  ;;  %v1128_v23 = vsel %vm2744_vm9, 1, %v2734_v49 }
  0x7c   :  { %v878_v3 = vshrl.u32 %v2073_v45, 16  ;;  %v588_v12 = vshrl.u32 %v2095_v36, 16  ;;  %v1154_v10 = vand.u32 65535, %v2028_v19  ;;  %v501_v19 = vsel %vm2022_vm5, 1, %v2734_v49 }
  0x7d   :  { %v359_v26 = vsel %vm316_vm3, %v314_v24, 0.0  ;;  %v854_v39 = vcvt.s32.f32 %v852_v48  ;;  %v1142_v24 = vshrl.u32 %v2045_v56, 16  ;;  %vm2745_vm11 = vcmp.eq.s32.totalorder %v1826_v41, 1 }
  0x7e   :  { %v1559_v13 = vpop.eup %1558  ;;  %360 = vadd.xlane.f32.xlu0 %v359_v26  ;;  %v590_v2 = vcvt.s32.f32 %v588_v12  ;;  %v2139_v35 = vsel %vm316_vm3, %v501_v19, 0  ;;  %vm135_vm4 = vcmp.gt.f32.partialorder %v1876_v46, 0.0  ;;  %vm2746_vm7 = vmmov %vm2745_vm11  ;;  %vm2748_vm14 = vcmp.eq.s32.totalorder %v1849_v63, 1 }
  0x7f   :  { %v299_v33 = vmul.f32 0.6931472, %v1559_v13  ;;  %v1183_v13 = vcvt.s32.f32 %v1181_v17  ;;  %v1144_v7 = vcvt.s32.f32 %v1142_v24  ;;  %v627_v53 = vshrl.u32 %v2139_v35, 16  ;;  %vm2750_vm1 = vmmov %vm2748_vm14 }
  0x80   :  { %vm137_vm0 = vcmp.gt.f32.partialorder %v1895_v21, 0.0  ;;  %vm2751_vm8 = vcmp.eq.s32.totalorder %v1886_v60, 1 }
  0x81   :  { %v315_v1 = vadd.f32 %v299_v33, %v187_v51  ;;  %v2056_v51 = vsel %vm316_vm3, %v813_v14, 0  ;;  %v1168_v33 = vshrl.u32 %v2059_v50, 16  ;;  %v864_v14 = vand.u32 65535, %v2004_v25  ;;  %vm489_vm9 = vmand %vm137_vm0, %vm2751_vm8 }
  0x82   :  { %580 = vadd.xlane.f32.xlu0 %v577_v27  ;;  %v891_v26 = vshrl.u32 %v2056_v51, 16  ;;  %v2070_v27 = vsel %vm316_vm3, %v1129_v16, 0  ;;  %v851_v16 = vand.u32 65535, %v2031_v31 }
  0x83   :  { %v362_v40 = vsel %vm316_vm3, %v315_v1, 0.0  ;;  %v1207_v1 = vshrl.u32 %v2070_v27, 16  ;;  %v1170_v22 = vcvt.s32.f32 %v1168_v33  ;;  %v1180_v33 = vand.u32 65535, %v2042_v54 }
  0x84   :  { %363 = vadd.xlane.f32.xlu1 %v362_v40  ;;  %v893_v38 = vcvt.s32.f32 %v891_v26  ;;  %v2084_v40 = vsel %vm316_vm3, %v499_v62, 0  ;;  %v1131_v26 = vsel %vm99_vm10, 1, %v2734_v49  ;;  %v1141_v62 = vand.u32 65535, %v2045_v56 }
  0x85   :  { %v1209_v28 = vcvt.s32.f32 %v1207_v1  ;;  %v601_v37 = vshrl.u32 %v2084_v40, 16  ;;  %v1167_v1 = vand.u32 65535, %v2059_v50  ;;  %v817_v50 = vsel %vm133_vm2, 1, %v2734_v49 }
  0x86   :  { %844 = vadd.xlane.f32.xlu0 %v841_v42  ;;  %v2087_v42 = vsel %vm316_vm3, %v1128_v23, 0  ;;  %v2123_v23 = vsel %vm316_vm3, %v1131_v26, 0  ;;  %v1143_v56 = vcvt.s32.f32 %v1141_v62  ;;  %v2156_v12 = vsel %vm316_vm3, %v817_v50, 0 }
  0x87   :  { %v1194_v11 = vshrl.u32 %v2087_v42, 16  ;;  %v603_v58 = vcvt.s32.f32 %v601_v37  ;;  %v1233_v54 = vshrl.u32 %v2123_v23, 16  ;;  %v943_v61 = vshrl.u32 %v2156_v12, 16 }
  0x88   :  { %578 = vadd.xlane.f32.xlu1 %v576_v6  ;;  %v880_v6 = vcvt.s32.f32 %v878_v3  ;;  %vm2747_vm10 = vcmp.eq.s32.totalorder %v1867_v34, 1  ;;  %v1134_v34 = vsel %vm2750_vm1, 1, %v2734_v49  ;;  %vm392_vm1 = vcmask 130112  }
  0x89   :  { %v1196_v5 = vcvt.s32.f32 %v1194_v11  ;;  %v1235_v3 = vcvt.s32.f32 %v1233_v54  ;;  %v629_v11 = vcvt.s32.f32 %v627_v53  ;;  %vm2749_vm5 = vmmov %vm2747_vm10  ;;  %v2254_v63 = vsel %vm316_vm3, %v1134_v34, 0 }
  0x8a   :  { %870 = vadd.xlane.f32.xlu0 %v867_v8  ;;  %v838_v8 = vand.u32 65535, %v1992_v18  ;;  %v814_v18 = vsel %vm130_vm6, 1, %v2734_v49  ;;  %vm132_vm6 = vcmp.gt.f32.partialorder %v1828_v44, 0.0  ;;  %v1206_v44 = vand.u32 65535, %v2070_v27 }
  0x8b   :  { %v2113_v25 = vsel %vm316_vm3, %v814_v18, 0  ;;  %vm484_vm13 = vmand %vm132_vm6, %vm2745_vm11  ;;  %v945_v18 = vcvt.s32.f32 %v943_v61 }
  0x8c   :  { %831 = vadd.xlane.f32.xlu1 %v828_v55  ;;  %v815_v55 = vsel %vm131_vm12, 1, %v2734_v49  ;;  %v840_v48 = vcvt.s32.f32 %v838_v8  ;;  %v904_v29 = vshrl.u32 %v2113_v25, 16  ;;  %v500_v9 = vsel %vm484_vm13, 1, %v2734_v49  ;;  %vm487_vm12 = vmand %vm135_vm4, %vm2747_vm10 }
  0x8d   :  { %v2105_v17 = vsel %vm316_vm3, %v815_v55, 0  ;;  %v816_v55 = vsel %vm132_vm6, 1, %v2734_v49  ;;  %v1208_v52 = vcvt.s32.f32 %v1206_v44  ;;  %v503_v41 = vsel %vm487_vm12, 1, %v2734_v49 }
  0x8e   :  { %1160 = vadd.xlane.f32.xlu0 %v1157_v4  ;;  %v825_v4 = vand.u32 65535, %v2007_v15  ;;  %v917_v30 = vshrl.u32 %v2105_v17, 16  ;;  %v906_v31 = vcvt.s32.f32 %v904_v29  ;;  %v600_v29 = vand.u32 65535, %v2084_v40 }
  0x8f   :  { %vm136_vm6 = vcmp.gt.f32.partialorder %v1884_v59, 0.0  ;;  %vm2756_vm12 = vcmp.eq.s32.totalorder %v1921_v47, 1 }
  0x90   :  { %857 = vadd.xlane.f32.xlu1 %v854_v39  ;;  %v866_v39 = vcvt.s32.f32 %v864_v14  ;;  %v827_v24 = vcvt.s32.f32 %v825_v4  ;;  %v919_v15 = vcvt.s32.f32 %v917_v30  ;;  %v1133_v4 = vsel %vm101_vm15, 1, %v2734_v49 }
  0x91   :  { %vm134_vm15 = vcmp.gt.f32.partialorder %v1851_v0, 0.0  ;;  %v602_v62 = vcvt.s32.f32 %v600_v29  ;;  %v820_v21 = vsel %vm136_vm6, 1, %v2734_v49 }
  0x92   :  { %1186 = vadd.xlane.f32.xlu0 %v1183_v13  ;;  %v853_v13 = vcvt.s32.f32 %v851_v16  ;;  %vm486_vm2 = vmand %vm134_vm15, %vm2748_vm14  ;;  %v818_v46 = vsel %vm134_vm15, 1, %v2734_v49  ;;  %vm138_vm14 = vcmp.gt.f32.partialorder %v1917_v32, 0.0 }
  0x94   :  { %1147 = vadd.xlane.f32.xlu1 %v1144_v7  ;;  %v1156_v7 = vcvt.s32.f32 %v1154_v10 }
  0x96   :  { %896 = vadd.xlane.f32.xlu0 %v893_v38  ;;  %v1182_v38 = vcvt.s32.f32 %v1180_v33 }
  0x98   :  { %1173 = vadd.xlane.f32.xlu1 %v1170_v22  ;;  %v2142_v22 = vsel %vm316_vm3, %v1130_v20, 0  ;;  %v587_v20 = vand.u32 65535, %v2095_v36 }
  0x99   :  { %v1220_v37 = vshrl.u32 %v2142_v22, 16 }
  0x9a   :  { %1212 = vadd.xlane.f32.xlu0 %v1209_v28  ;;  %v1169_v28 = vcvt.s32.f32 %v1167_v1  ;;  %v589_v53 = vcvt.s32.f32 %v587_v20  ;;  %v821_v20 = vsel %vm137_vm0, 1, %v2734_v49  ;;  %vm2758_vm0 = vmmov %vm2756_vm12 }
  0x9b   :  { %v1222_v8 = vcvt.s32.f32 %v1220_v37  ;;  %v1139_v32 = vsel %vm2758_vm0, 1, %v2734_v49 }
  0x9c   :  { %883 = vadd.xlane.f32.xlu1 %v880_v6  ;;  %v2148_v6 = vsel %vm316_vm3, %v500_v9, 0 }
  0x9e   :  { %606 = vadd.xlane.f32.xlu0 %v603_v58  ;;  %v890_v58 = vand.u32 65535, %v2056_v51  ;;  %v2164_v51 = vsel %vm316_vm3, %v816_v55, 0  ;;  %v1135_v55 = vsel %vm2749_vm5, 1, %v2734_v49 }
  0x9f   :  { %v930_v30 = vshrl.u32 %v2164_v51, 16 }
  0xa0   :  { %1199 = vadd.xlane.f32.xlu1 %v1196_v5  ;;  %v614_v5 = vshrl.u32 %v2148_v6, 16 }
  0xa1   :  { %v932_v16 = vcvt.s32.f32 %v930_v30  ;;  %v505_v30 = vsel %vm489_vm9, 1, %v2734_v49  ;;  %vm459_vm9 = vcmask 1042434  }
  0xa2   :  { %842 = vadd.xlane.f32.xlu0 %v840_v48  ;;  %v892_v48 = vcvt.s32.f32 %v890_v58  ;;  %v616_v14 = vcvt.s32.f32 %v614_v5  ;;  %v2228_v5 = vsel %vm316_vm3, %v818_v46, 0 }
  0xa4   :  { %593 = vadd.xlane.f32.xlu1 %v590_v2  ;;  %v877_v2 = vand.u32 65535, %v2073_v45  ;;  %v1132_v45 = vsel %vm2746_vm7, 1, %v2734_v49  ;;  %vm139_vm7 = vcmp.gt.f32.partialorder %v1930_v57, 0.0  ;;  %v822_v57 = vsel %vm138_vm14, 1, %v2734_v49 }
  0xa5   :  { %v2186_v10 = vsel %vm316_vm3, %v1132_v45, 0  ;;  %vm491_vm15 = vmand %vm139_vm7, %vm2756_vm12 }
  0xa6   :  { %868 = vadd.xlane.f32.xlu0 %v866_v39  ;;  %v879_v39 = vcvt.s32.f32 %v877_v2  ;;  %v2239_v2 = vsel %vm316_vm3, %v1135_v55, 0 }
  0xa8   :  { %829 = vadd.xlane.f32.xlu1 %v827_v24  ;;  %v2173_v24 = vsel %vm316_vm3, %v1133_v4, 0 }
  0xa9   :  { %v1259_v27 = vshrl.u32 %v2173_v24, 16 }
  0xaa   :  { %922 = vadd.xlane.f32.xlu0 %v919_v15  ;;  %v1193_v15 = vand.u32 65535, %v2087_v42  ;;  %v1246_v42 = vshrl.u32 %v2186_v10, 16 }
  0xac   :  { %855 = vadd.xlane.f32.xlu1 %v853_v13  ;;  %v1261_v13 = vcvt.s32.f32 %v1259_v27  ;;  %v1195_v26 = vcvt.s32.f32 %v1193_v15  ;;  %v1248_v19 = vcvt.s32.f32 %v1246_v42  ;;  %v626_v27 = vand.u32 65535, %v2139_v35 }
  0xae   :  { %1158 = vadd.xlane.f32.xlu0 %v1156_v7  ;;  %v2196_v7 = vsel %vm316_vm3, %v503_v41, 0  ;;  %v1272_v41 = vshrl.u32 %v2254_v63, 16  ;;  %v628_v35 = vcvt.s32.f32 %v626_v27  ;;  %v507_v27 = vsel %vm491_vm15, 1, %v2734_v49 }
  0xaf   :  { %v653_v40 = vshrl.u32 %v2196_v7, 16 }
  0xb0   :  { %909 = vadd.xlane.f32.xlu1 %v906_v31  ;;  %v502_v31 = vsel %vm486_vm2, 1, %v2734_v49  ;;  %vm2757_vm2 = vcmp.eq.s32.totalorder %v1907_v43, 1 }
  0xb1   :  { %v2206_v54 = vsel %vm316_vm3, %v502_v31, 0  ;;  %v655_v1 = vcvt.s32.f32 %v653_v40  ;;  %v1274_v31 = vcvt.s32.f32 %v1272_v41  ;;  %vm490_vm5 = vmand %vm138_vm14, %vm2757_vm2 }
  0xb2   :  { %1184 = vadd.xlane.f32.xlu0 %v1182_v38 }
  0xb4   :  { %1145 = vadd.xlane.f32.xlu1 %v1143_v56  ;;  %v819_v56 = vsel %vm135_vm4, 1, %v2734_v49  ;;  %vm2754_vm4 = vmmov %vm2751_vm8  ;;  %vm457_vm8 = vcmask 1041409  }
  0xb5   :  { %v2216_v36 = vsel %vm316_vm3, %v819_v56, 0 }
  0xb6   :  { %1238 = vadd.xlane.f32.xlu0 %v1235_v3  ;;  %v916_v3 = vand.u32 65535, %v2105_v17  ;;  %v903_v17 = vand.u32 65535, %v2113_v25 }
  0xb8   :  { %1171 = vadd.xlane.f32.xlu1 %v1169_v28  ;;  %v640_v28 = vshrl.u32 %v2206_v54, 16  ;;  %v918_v50 = vcvt.s32.f32 %v916_v3  ;;  %v905_v61 = vcvt.s32.f32 %v903_v17  ;;  %v2298_v17 = vsel %vm316_vm3, %v820_v21, 0 }
  0xba   :  { %632 = vadd.xlane.f32.xlu0 %v629_v11  ;;  %v969_v11 = vshrl.u32 %v2216_v36, 16  ;;  %v642_v58 = vcvt.s32.f32 %v640_v28 }
  0xbc   :  { %1225 = vadd.xlane.f32.xlu1 %v1222_v8  ;;  %v971_v0 = vcvt.s32.f32 %v969_v11 }
  0xbe   :  { %894 = vadd.xlane.f32.xlu0 %v892_v48  ;;  %v1232_v48 = vand.u32 65535, %v2123_v23 }
  0xc0   :  { %619 = vadd.xlane.f32.xlu1 %v616_v14  ;;  %v956_v14 = vshrl.u32 %v2228_v5, 16  ;;  %v1234_v4 = vcvt.s32.f32 %v1232_v48 }
  0xc2   :  { %948 = vadd.xlane.f32.xlu0 %v945_v18  ;;  %v2198_v33 = vpop.xlane.xlu0 %515  ;;  %v2203_v38 = vpop.xlane.xlu1 %513  ;;  %v1285_v18 = vshrl.u32 %v2239_v2, 16  ;;  %v958_v44 = vcvt.s32.f32 %v956_v14 }
  0xc4   :  { %881 = vadd.xlane.f32.xlu1 %v879_v39  ;;  %v1219_v39 = vand.u32 65535, %v2142_v22 }
  0xc6   :  { %1210 = vadd.xlane.f32.xlu0 %v1208_v52  ;;  %v2211_v9 = vpop.xlane.xlu0 %528  ;;  %v2218_v37 = vpop.xlane.xlu1 %526  ;;  %v1287_v52 = vcvt.s32.f32 %v1285_v18  ;;  %v1221_v22 = vcvt.s32.f32 %v1219_v39  ;;  %v1245_v39 = vand.u32 65535, %v2186_v10 }
  0xc8   :  { %935 = vadd.xlane.f32.xlu1 %v932_v16  ;;  %v2752_v16 = vld [vmem:[#allocation14_spill] sm:$0xff]  ;;  %v1247_v10 = vcvt.s32.f32 %v1245_v39  ;;  %v1284_v39 = vand.u32 65535, %v2239_v2 }
  0xc9   :  { %vm2753_vm11 = vcmp.eq.s32.totalorder %v2752_v16, 1 }
  0xca   :  { %1264 = vadd.xlane.f32.xlu0 %v1261_v13  ;;  %v2225_v8 = vpop.xlane.xlu0 %541  ;;  %v2236_v25 = vpop.xlane.xlu1 %539  ;;  %vm488_vm13 = vmand %vm136_vm6, %vm2753_vm11  ;;  %v2268_v13 = vsel %vm316_vm3, %v505_v30, 0 }
  0xcb   :  { %v504_v29 = vsel %vm488_vm13, 1, %v2734_v49  ;;  %v679_v42 = vshrl.u32 %v2268_v13, 16  ;;  %vm2755_vm10 = vmmov %vm2753_vm11  ;;  %vm461_vm11 = vcmask 1043459   ;;  %vm463_vm13 = vcmask 1044484  }
  0xcc   :  { %1197 = vadd.xlane.f32.xlu1 %v1195_v26  ;;  %v2276_v40 = vsel %vm316_vm3, %v504_v29, 0  ;;  %v1136_v60 = vsel %vm2755_vm10, 1, %v2734_v49  ;;  %vm2759_vm6 = vmmov %vm2757_vm2  ;;  %vm469_vm10 = vcmask 1047559  }
  0xcd   :  { %v681_v56 = vcvt.s32.f32 %v679_v42  ;;  %v381_v42 = vlaneseq }
  0xce   :  { %604 = vadd.xlane.f32.xlu0 %v602_v62  ;;  %v2248_v23 = vpop.xlane.xlu0 %554  ;;  %v2257_v45 = vpop.xlane.xlu1 %552  ;;  %v613_v62 = vand.u32 65535, %v2148_v6  ;;  %v2288_v6 = vsel %vm316_vm3, %v821_v20, 0 }
  0xcf   :  { %v995_v11 = vshrl.u32 %v2288_v6, 16  ;;  %v2353_v21 = vand.u32 127, %v381_v42 }
  0xd0   :  { %1251 = vadd.xlane.f32.xlu1 %v1248_v19  ;;  %v615_v3 = vcvt.s32.f32 %v613_v62  ;;  %v506_v62 = vsel %vm490_vm5, 1, %v2734_v49 }
  0xd1   :  { %v997_v59 = vcvt.s32.f32 %v995_v11  ;;  %vm1445_vm12 = vcmp.eq.s32.totalorder %v2353_v21, 0 }
  0xd2   :  { %658 = vadd.xlane.f32.xlu0 %v655_v1  ;;  %v2264_v15 = vpop.xlane.xlu0 %567  ;;  %v2271_v26 = vpop.xlane.xlu1 %565  ;;  %v942_v1 = vand.u32 65535, %v2156_v12 }
  0xd4   :  { %591 = vadd.xlane.f32.xlu1 %v589_v53  ;;  %v666_v53 = vshrl.u32 %v2276_v40, 16 }
  0xd6   :  { %920 = vadd.xlane.f32.xlu0 %v918_v50  ;;  %v944_v50 = vcvt.s32.f32 %v942_v1  ;;  %v668_v12 = vcvt.s32.f32 %v666_v53  ;;  %v639_v1 = vand.u32 65535, %v2206_v54  ;;  %v823_v53 = vsel %vm139_vm7, 1, %v2734_v49 }
  0xd7   :  { %vm467_vm7 = vcmask 1046534  }
  0xd8   :  { %645 = vadd.xlane.f32.xlu1 %v642_v58  ;;  %v929_v58 = vand.u32 65535, %v2164_v51  ;;  %v982_v51 = vshrl.u32 %v2298_v17, 16 }
  0xda   :  { %974 = vadd.xlane.f32.xlu0 %v971_v0  ;;  %v1137_v0 = vsel %vm2754_vm4, 1, %v2734_v49  ;;  %v931_v14 = vcvt.s32.f32 %v929_v58  ;;  %v641_v58 = vcvt.s32.f32 %v639_v1  ;;  %v1271_v1 = vand.u32 65535, %v2254_v63 }
  0xdb   :  { %v2311_v34 = vsel %vm316_vm3, %v1137_v0, 0  ;;  %vm465_vm4 = vcmask 1045509  }
  0xdc   :  { %907 = vadd.xlane.f32.xlu1 %v905_v61  ;;  %v1258_v61 = vand.u32 65535, %v2173_v24  ;;  %v1311_v18 = vshrl.u32 %v2311_v34, 16 }
  0xde   :  { %1236 = vadd.xlane.f32.xlu0 %v1234_v4  ;;  %v1260_v24 = vcvt.s32.f32 %v1258_v61  ;;  %v1313_v16 = vcvt.s32.f32 %v1311_v18  ;;  %v384_v61 = vshrl.u32 %v381_v42, 7 }
  0xe0   :  { %961 = vadd.xlane.f32.xlu1 %v958_v44  ;;  %v984_v44 = vcvt.s32.f32 %v982_v51 }
  0xe2   :  { %1290 = vadd.xlane.f32.xlu0 %v1287_v52  ;;  %v2328_v52 = vsel %vm316_vm3, %v1136_v60, 0 }
  0xe3   :  { %v1298_v41 = vshrl.u32 %v2328_v52, 16 }
  0xe4   :  { %1223 = vadd.xlane.f32.xlu1 %v1221_v22  ;;  %v652_v22 = vand.u32 65535, %v2196_v7 }
  0xe5   :  { %v2278_v19 = vpop.xlane.xlu0 %318 }
  0xe6   :  { %630 = vadd.xlane.f32.xlu0 %v628_v35  ;;  %v2340_v35 = vsel %vm316_vm3, %v507_v27, 0  ;;  %v654_v7 = vcvt.s32.f32 %v652_v22  ;;  %v2378_v27 = vsub.s32 %v2353_v21, %v384_v61 }
  0xe7   :  { %v705_v20 = vshrl.u32 %v2340_v35, 16 }
  0xe8   :  { %1277 = vadd.xlane.f32.xlu1 %v1274_v31 }
  0xe9   :  { %v2285_v28 = vpop.xlane.xlu1 %324  ;;  %v707_v11 = vcvt.s32.f32 %v705_v20 }
  0xea   :  { %v2290_v46 = vpop.xlane.xlu0 %321  ;;  %684 = vadd.xlane.f32.xlu0 %v681_v56  ;;  %v1300_v56 = vcvt.s32.f32 %v1298_v41  ;;  %v397_v2 = vrot.slane %v2285_v28, %v2378_v27  ;;  %v386_v28 = vrot.slane %v2278_v19, %v2378_v27 }
  0xec   :  { %617 = vadd.xlane.f32.xlu1 %v615_v3  ;;  %v2348_v3 = vsel %vm316_vm3, %v506_v62, 0  ;;  %v2390_v62 = vsel %vm316_vm3, %v1139_v32, 0 }
  0xed   :  { %v2300_v55 = vpop.xlane.xlu1 %327  ;;  %v692_v0 = vshrl.u32 %v2348_v3, 16  ;;  %v1337_v19 = vshrl.u32 %v2390_v62, 16 }
  0xee   :  { %v2305_v48 = vpop.xlane.xlu0 %330  ;;  %946 = vadd.xlane.f32.xlu0 %v944_v50 }
  0xf0   :  { %671 = vadd.xlane.f32.xlu1 %v668_v12  ;;  %v968_v12 = vand.u32 65535, %v2216_v36  ;;  %v955_v36 = vand.u32 65535, %v2228_v5 }
  0xf1   :  { %v2313_v4 = vpop.xlane.xlu1 %333 }
  0xf2   :  { %1000 = vadd.xlane.f32.xlu0 %v997_v59  ;;  %v2362_v59 = vsel %vm316_vm3, %v823_v53, 0  ;;  %v970_v51 = vcvt.s32.f32 %v968_v12  ;;  %v957_v22 = vcvt.s32.f32 %v955_v36 }
  0xf3   :  { %v2324_v30 = vpop.xlane.xlu0 %336  ;;  %v1021_v60 = vshrl.u32 %v2362_v59, 16 }
  0xf4   :  { %933 = vadd.xlane.f32.xlu1 %v931_v14  ;;  %v387_v14 = vadd.s32 4294967288, %v2353_v21 }
  0xf5   :  { %v2337_v29 = vpop.xlane.xlu1 %339 }
  0xf6   :  { %1262 = vadd.xlane.f32.xlu0 %v1260_v24  ;;  %v694_v24 = vcvt.s32.f32 %v692_v0 }
  0xf8   :  { %987 = vadd.xlane.f32.xlu1 %v984_v44  ;;  %v2342_v31 = vpop.xlane.xlu0 %342  ;;  %v2371_v44 = vsel %vm316_vm3, %v822_v57, 0 }
  0xf9   :  { %v1008_v41 = vshrl.u32 %v2371_v44, 16 }
  0xfa   :  { %1316 = vadd.xlane.f32.xlu0 %v1313_v16  ;;  %v2380_v16 = vsub.s32 %v387_v14, %v384_v61  ;;  %v1273_v61 = vcvt.s32.f32 %v1271_v1 }
  0xfb   :  { %v2355_v50 = vpop.xlane.xlu1 %345 }
  0xfc   :  { %1249 = vadd.xlane.f32.xlu1 %v1247_v10  ;;  %v1023_v10 = vcvt.s32.f32 %v1021_v60  ;;  %v391_v47 = vrot.slane %v2290_v46, %v2380_v16  ;;  %v401_v42 = vrot.slane %v2300_v55, %v2380_v16  ;;  %v410_v20 = vrot.slane %v2313_v4, %v2380_v16 }
  0xfd   :  { %v2359_v54 = vpop.xlane.xlu0 %348  ;;  %v415_v46 = vrot.slane %v2324_v30, %v2378_v27  ;;  %v419_v55 = vrot.slane %v2337_v29, %v2380_v16  ;;  %v424_v4 = vrot.slane %v2342_v31, %v2378_v27  ;;  %v428_v63 = vrot.slane %v2355_v50, %v2380_v16 }
  0xfe   :  { %656 = vadd.xlane.f32.xlu0 %v654_v7  ;;  %v406_v7 = vrot.slane %v2305_v48, %v2378_v27  ;;  %v1138_v48 = vsel %vm2759_vm6, 1, %v2734_v49  ;;  %v393_v30 = vsel %vm392_vm1, %v391_v47, %v386_v28  ;;  %v402_v12 = vsel %vm392_vm1, %v401_v42, %v397_v2 }
  0xff   :  { %v433_v29 = vrot.slane %v2359_v54, %v2378_v27  ;;  %v2420_v0 = vsel %vm316_vm3, %v1138_v48, 0  ;;  %v420_v57 = vsel %vm392_vm1, %v419_v55, %v415_v46  ;;  %v458_v54 = vsel %vm457_vm8, %v402_v12, %v393_v30 }
 0x100   :  { %1303 = vadd.xlane.f32.xlu1 %v1300_v56  ;;  %v1286_v56 = vcvt.s32.f32 %v1284_v39  ;;  %v411_v31 = vsel %vm392_vm1, %v410_v20, %v406_v7  ;;  %v429_v14 = vsel %vm392_vm1, %v428_v63, %v424_v4  ;;  %v1324_v39 = vshrl.u32 %v2420_v0, 16 }
 0x101   :  { %v460_v36 = vsel %vm459_vm9, %v411_v31, %v458_v54  ;;  %v678_v47 = vand.u32 65535, %v2268_v13  ;;  %v665_v42 = vand.u32 65535, %v2276_v40  ;;  %v994_v13 = vand.u32 65535, %v2288_v6 }
 0x102   :  { %710 = vadd.xlane.f32.xlu0 %v707_v11  ;;  %v352_v18 = vpop.xlane.xlu1 %351  ;;  %v1010_v11 = vcvt.s32.f32 %v1008_v41  ;;  %v462_v32 = vsel %vm461_vm11, %v420_v57, %v460_v36  ;;  %v981_v63 = vand.u32 65535, %v2298_v17  ;;  %v691_v57 = vand.u32 65535, %v2348_v3 }
 0x103   :  { %v355_v5 = vpop.xlane.xlu0 %354  ;;  %v437_v43 = vrot.slane %v352_v18, %v2380_v16  ;;  %v464_v41 = vsel %vm463_vm13, %v429_v14, %v462_v32  ;;  %v680_v40 = vcvt.s32.f32 %v678_v47 }
 0x104   :  { %643 = vadd.xlane.f32.xlu1 %v641_v58  ;;  %v442_v58 = vrot.slane %v355_v5, %v2378_v27  ;;  %v983_v31 = vcvt.s32.f32 %v981_v63  ;;  %v693_v36 = vcvt.s32.f32 %v691_v57 }
 0x105   :  { %v438_v60 = vsel %vm392_vm1, %v437_v43, %v433_v29  ;;  %v1310_v29 = vand.u32 65535, %v2311_v34  ;;  %v996_v43 = vcvt.s32.f32 %v994_v13  ;;  %v1020_v34 = vand.u32 65535, %v2362_v59 }
 0x106   :  { %972 = vadd.xlane.f32.xlu0 %v970_v51  ;;  %v358_v53 = vpop.xlane.xlu1 %357  ;;  %v1339_v51 = vcvt.s32.f32 %v1337_v19  ;;  %v466_v7 = vsel %vm465_vm4, %v438_v60, %v464_v41  ;;  %v667_v19 = vcvt.s32.f32 %v665_v42  ;;  %v1323_v59 = vand.u32 65535, %v2420_v0 }
 0x107   :  { %v446_v50 = vrot.slane %v358_v53, %v2380_v16  ;;  %v1312_v17 = vcvt.s32.f32 %v1310_v29  ;;  %v1022_v3 = vcvt.s32.f32 %v1020_v34 }
 0x108   :  { %697 = vadd.xlane.f32.xlu1 %v694_v24 }
 0x109   :  { %v447_v5 = vsel %vm392_vm1, %v446_v50, %v442_v58  ;;  %v704_v50 = vand.u32 65535, %v2340_v35 }
 0x10a   :  { %1026 = vadd.xlane.f32.xlu0 %v1023_v10  ;;  %v468_v46 = vsel %vm467_vm7, %v447_v5, %v466_v7  ;;  %v1325_v5 = vcvt.s32.f32 %v1323_v59 }
 0x10b   :  { %v361_v49 = vpop.xlane.xlu0 %360 }
 0x10c   :  { %959 = vadd.xlane.f32.xlu1 %v957_v22  ;;  %v451_v24 = vrot.slane %v361_v49, %v2378_v27  ;;  %v1297_v49 = vand.u32 65535, %v2328_v52  ;;  %v706_v52 = vcvt.s32.f32 %v704_v50 }
 0x10e   :  { %1288 = vadd.xlane.f32.xlu0 %v1286_v56  ;;  %v1326_v56 = vcvt.s32.f32 %v1324_v39 }
 0x10f   :  { %v581_v18 = vpop.xlane.xlu0 %580 }
 0x110   :  { %1013 = vadd.xlane.f32.xlu1 %v1010_v11  ;;  %v583_v10 = vcvt.f32.s32 %v581_v18 }
 0x111   :  { %v364_v22 = vpop.xlane.xlu1 %363 }
 0x112   :  { %v455_v2 = vrot.slane %v364_v22, %v2380_v16  ;;  %1342 = vadd.xlane.f32.xlu0 %v1339_v51  ;;  %v584_v20 = vshll.u32 %v583_v10, 16  ;;  %v1007_v51 = vand.u32 65535, %v2371_v44 }
 0x113   :  { %v845_v1 = vpop.xlane.xlu0 %844 }
 0x114   :  { %1275 = vadd.xlane.f32.xlu1 %v1273_v61  ;;  %v456_v28 = vsel %vm392_vm1, %v455_v2, %v451_v24  ;;  %v1299_v61 = vcvt.s32.f32 %v1297_v49  ;;  %v1336_v24 = vand.u32 65535, %v2390_v62  ;;  %v1009_v18 = vcvt.s32.f32 %v1007_v51 }
 0x115   :  { %v579_v55 = vpop.xlane.xlu1 %578  ;;  %v470_v53 = vsel %vm469_vm10, %v456_v28, %v468_v46  ;;  %v847_v10 = vcvt.f32.s32 %v845_v1 }
 0x116   :  { %v582_v48 = vcvt.f32.s32 %v579_v55  ;;  %v472_v4 = vsel %vm316_vm3, %v470_v53, 0.0  ;;  %v1338_v44 = vcvt.s32.f32 %v1336_v24 }
 0x117   :  { %473 = vadd.xlane.f32.xlu0 %v472_v4  ;;  %v871_v30 = vpop.xlane.xlu0 %870  ;;  %v848_v2 = vshll.u32 %v847_v10, 16 }
 0x118   :  { %v2442_v11 = vadd.s32 %v584_v20, %v582_v48  ;;  %1329 = vadd.xlane.f32.xlu1 %v1326_v56  ;;  %v873_v47 = vcvt.f32.s32 %v871_v30 }
 0x119   :  { %v832_v12 = vpop.xlane.xlu1 %831 }
 0x11a   :  { %v834_v0 = vcvt.f32.s32 %v832_v12  ;;  %v874_v28 = vshll.u32 %v873_v47, 16 }
 0x11b   :  { %682 = vadd.xlane.f32.xlu0 %v680_v40  ;;  %v1161_v58 = vpop.xlane.xlu0 %1160 }
 0x11c   :  { %669 = vadd.xlane.f32.xlu1 %v667_v19  ;;  %v835_v53 = vshll.u32 %v834_v0, 16  ;;  %v1163_v19 = vcvt.f32.s32 %v1161_v58 }
 0x11d   :  { %v858_v6 = vpop.xlane.xlu1 %857 }
 0x11e   :  { %v860_v48 = vcvt.f32.s32 %v858_v6  ;;  %v1164_v6 = vshll.u32 %v1163_v19, 16 }
 0x11f   :  { %998 = vadd.xlane.f32.xlu0 %v996_v43  ;;  %v2448_v54 = vpop.xlane.xlu0 %1186 }
 0x120   :  { %985 = vadd.xlane.f32.xlu1 %v983_v31  ;;  %v861_v29 = vshll.u32 %v860_v48, 16  ;;  %v1189_v57 = vcvt.f32.s32 %v2448_v54 }
 0x121   :  { %v2450_v14 = vpop.xlane.xlu1 %1147 }
 0x122   :  { %v1190_v24 = vshll.u32 %v1189_v57, 16  ;;  %v557_v57 = vcvt.f32.s32 %v2248_v23  ;;  %v570_v23 = vcvt.f32.s32 %v2264_v15  ;;  %v530_v15 = vcvt.f32.s32 %v2218_v37 }
 0x123   :  { %1314 = vadd.xlane.f32.xlu0 %v1312_v17  ;;  %v2454_v60 = vpop.xlane.xlu0 %896 }
 0x124   :  { %1301 = vadd.xlane.f32.xlu1 %v1299_v61 }
 0x125   :  { %v2456_v35 = vpop.xlane.xlu1 %1173 }
 0x126   :  { %v1176_v10 = vcvt.f32.s32 %v2456_v35  ;;  %v899_v35 = vcvt.f32.s32 %v2454_v60 }
 0x127   :  { %708 = vadd.xlane.f32.xlu0 %v706_v52  ;;  %v2459_v39 = vpop.xlane.xlu0 %1212  ;;  %v1150_v52 = vcvt.f32.s32 %v2450_v14 }
 0x128   :  { %695 = vadd.xlane.f32.xlu1 %v693_v36  ;;  %v1177_v0 = vshll.u32 %v1176_v10, 16  ;;  %v1215_v60 = vcvt.f32.s32 %v2459_v39  ;;  %v558_v10 = vshll.u32 %v557_v57, 16 }
 0x129   :  { %v2462_v32 = vpop.xlane.xlu1 %883 }
 0x12b   :  { %1024 = vadd.xlane.f32.xlu0 %v1022_v3  ;;  %v2464_v22 = vpop.xlane.xlu0 %606 }
 0x12c   :  { %1011 = vadd.xlane.f32.xlu1 %v1009_v18 }
 0x12d   :  { %v2466_v41 = vpop.xlane.xlu1 %1199 }
 0x12e   :  { %v1202_v39 = vcvt.f32.s32 %v2466_v41  ;;  %v609_v41 = vcvt.f32.s32 %v2464_v22 }
 0x12f   :  { %1340 = vadd.xlane.f32.xlu0 %v1338_v44  ;;  %v843_v62 = vpop.xlane.xlu0 %842 }
 0x130   :  { %1327 = vadd.xlane.f32.xlu1 %v1325_v5  ;;  %v846_v7 = vcvt.f32.s32 %v843_v62  ;;  %v1151_v5 = vshll.u32 %v1150_v52, 16 }
 0x131   :  { %v2468_v42 = vpop.xlane.xlu1 %593 }
 0x132   :  { %v849_v20 = vadd.s32 %v848_v2, %v846_v7 }
 0x133   :  { %v869_v56 = vpop.xlane.xlu0 %868 }
 0x134   :  { %v872_v55 = vcvt.f32.s32 %v869_v56  ;;  %v1039_v13 = vrot.slane %v849_v20, %v2380_v16 }
 0x135   :  { %v830_v46 = vpop.xlane.xlu1 %829 }
 0x136   :  { %v833_v4 = vcvt.f32.s32 %v830_v46  ;;  %v875_v1 = vadd.s32 %v874_v28, %v872_v55 }
 0x137   :  { %v2471_v63 = vpop.xlane.xlu0 %922 }
 0x138   :  { %v836_v40 = vadd.s32 %v835_v53, %v833_v4  ;;  %v1048_v31 = vrot.slane %v875_v1, %v2380_v16 }
 0x139   :  { %v856_v30 = vpop.xlane.xlu1 %855 }
 0x13a   :  { %v1035_v43 = vrot.slane %v836_v40, %v2378_v27  ;;  %v859_v12 = vcvt.f32.s32 %v856_v30  ;;  %v900_v40 = vshll.u32 %v899_v35, 16 }
 0x13b   :  { %v1159_v17 = vpop.xlane.xlu0 %1158 }
 0x13c   :  { %v1040_v49 = vsel %vm392_vm1, %v1039_v13, %v1035_v43  ;;  %v862_v50 = vadd.s32 %v861_v29, %v859_v12  ;;  %v1162_v34 = vcvt.f32.s32 %v1159_v17  ;;  %v886_v43 = vcvt.f32.s32 %v2462_v32 }
 0x13d   :  { %v2477_v61 = vpop.xlane.xlu1 %909 }
 0x13e   :  { %v1044_v58 = vrot.slane %v862_v50, %v2378_v27  ;;  %v1165_v51 = vadd.s32 %v1164_v6, %v1162_v34  ;;  %v887_v50 = vshll.u32 %v886_v43, 16  ;;  %v544_v6 = vcvt.f32.s32 %v2225_v8 }
 0x13f   :  { %v1185_v3 = vpop.xlane.xlu0 %1184  ;;  %v543_v8 = vcvt.f32.s32 %v2236_v25 }
 0x140   :  { %v1049_v36 = vsel %vm392_vm1, %v1048_v31, %v1044_v58  ;;  %v1188_v44 = vcvt.f32.s32 %v1185_v3  ;;  %v1355_v2 = vrot.slane %v1165_v51, %v2380_v16  ;;  %v518_v51 = vcvt.f32.s32 %v2198_v33 }
 0x141   :  { %v1104_v18 = vsel %vm457_vm8, %v1049_v36, %v1040_v49  ;;  %v1146_v59 = vpop.xlane.xlu1 %1145  ;;  %v1216_v36 = vshll.u32 %v1215_v60, 16 }
 0x142   :  { %v1149_v54 = vcvt.f32.s32 %v1146_v59  ;;  %v1191_v62 = vadd.s32 %v1190_v24, %v1188_v44  ;;  %v531_v24 = vcvt.f32.s32 %v2211_v9  ;;  %v517_v9 = vcvt.f32.s32 %v2203_v38 }
 0x143   :  { %v2485_v14 = vpop.xlane.xlu0 %1238 }
 0x144   :  { %v1152_v47 = vadd.s32 %v1151_v5, %v1149_v54  ;;  %v1364_v46 = vrot.slane %v1191_v62, %v2380_v16  ;;  %v545_v5 = vshll.u32 %v544_v6, 16  ;;  %v556_v54 = vcvt.f32.s32 %v2257_v45 }
 0x145   :  { %v1172_v7 = vpop.xlane.xlu1 %1171  ;;  %v569_v45 = vcvt.f32.s32 %v2271_v26 }
 0x146   :  { %v1351_v20 = vrot.slane %v1152_v47, %v2378_v27  ;;  %v1175_v56 = vcvt.f32.s32 %v1172_v7  ;;  %v532_v7 = vshll.u32 %v531_v24, 16 }
 0x147   :  { %v2490_v53 = vpop.xlane.xlu0 %632 }
 0x148   :  { %v1356_v28 = vsel %vm392_vm1, %v1355_v2, %v1351_v20  ;;  %v1178_v55 = vadd.s32 %v1177_v0, %v1175_v56  ;;  %v519_v2 = vshll.u32 %v518_v51, 16  ;;  %v1203_v0 = vshll.u32 %v1202_v39, 16 }
 0x149   :  { %v2493_v48 = vpop.xlane.xlu1 %1225  ;;  %v571_v56 = vshll.u32 %v570_v23, 16  ;;  %v912_v23 = vcvt.f32.s32 %v2477_v61 }
 0x14a   :  { %v1360_v4 = vrot.slane %v1178_v55, %v2378_v27 }
 0x14b   :  { %v895_v13 = vpop.xlane.xlu0 %894 }
 0x14c   :  { %v1365_v1 = vsel %vm392_vm1, %v1364_v46, %v1360_v4  ;;  %v898_v29 = vcvt.f32.s32 %v895_v13  ;;  %v559_v46 = vadd.s32 %v558_v10, %v556_v54  ;;  %v610_v4 = vshll.u32 %v609_v41, 16 }
 0x14d   :  { %v1420_v19 = vsel %vm457_vm8, %v1365_v1, %v1356_v28  ;;  %v2498_v30 = vpop.xlane.xlu1 %619  ;;  %v546_v28 = vadd.s32 %v545_v5, %v543_v8  ;;  %v520_v1 = vadd.s32 %v519_v2, %v517_v9  ;;  %v533_v13 = vadd.s32 %v532_v7, %v530_v15 }
 0x14e   :  { %v901_v12 = vadd.s32 %v900_v40, %v898_v29  ;;  %v596_v40 = vcvt.f32.s32 %v2468_v42  ;;  %v572_v29 = vadd.s32 %v571_v56, %v569_v45  ;;  %v1241_v9 = vcvt.f32.s32 %v2485_v14 }
 0x14f   :  { %v2501_v49 = vpop.xlane.xlu0 %948  ;;  %v728_v26 = vrot.slane %v546_v28, %v2378_v27  ;;  %v719_v57 = vrot.slane %v520_v1, %v2378_v27  ;;  %v913_v7 = vshll.u32 %v912_v23, 16 }
 0x150   :  { %v1057_v34 = vrot.slane %v901_v12, %v2380_v16  ;;  %v732_v12 = vrot.slane %v559_v46, %v2380_v16  ;;  %v737_v51 = vrot.slane %v572_v29, %v2378_v27  ;;  %v1242_v56 = vshll.u32 %v1241_v9, 16 }
 0x151   :  { %v882_v31 = vpop.xlane.xlu1 %881  ;;  %v1228_v46 = vcvt.f32.s32 %v2493_v48 }
 0x152   :  { %v885_v17 = vcvt.f32.s32 %v882_v31 }
 0x153   :  { %v1211_v58 = vpop.xlane.xlu0 %1210  ;;  %v1229_v1 = vshll.u32 %v1228_v46, 16 }
 0x154   :  { %v888_v52 = vadd.s32 %v887_v50, %v885_v17  ;;  %v1214_v3 = vcvt.f32.s32 %v1211_v58  ;;  %v741_v50 = vrot.slane %v2442_v11, %v2380_v16  ;;  %v925_v17 = vcvt.f32.s32 %v2471_v63 }
 0x155   :  { %v2508_v32 = vpop.xlane.xlu1 %935 }
 0x156   :  { %v1053_v59 = vrot.slane %v888_v52, %v2378_v27  ;;  %v1217_v44 = vadd.s32 %v1216_v36, %v1214_v3  ;;  %v597_v52 = vshll.u32 %v596_v40, 16  ;;  %v733_v36 = vsel %vm392_vm1, %v732_v12, %v728_v26 }
 0x157   :  { %v2517_v62 = vpop.xlane.xlu0 %1264  ;;  %v742_v11 = vsel %vm392_vm1, %v741_v50, %v737_v51  ;;  %v926_v63 = vshll.u32 %v925_v17, 16 }
 0x158   :  { %v1058_v33 = vsel %vm392_vm1, %v1057_v34, %v1053_v59  ;;  %v1373_v55 = vrot.slane %v1217_v44, %v2380_v16  ;;  %v723_v34 = vrot.slane %v533_v13, %v2380_v16  ;;  %v635_v13 = vcvt.f32.s32 %v2490_v53 }
 0x159   :  { %v2522_v47 = vsel %vm459_vm9, %v1058_v33, %v1104_v18  ;;  %v1198_v25 = vpop.xlane.xlu1 %1197 }
 0x15a   :  { %v1201_v20 = vcvt.f32.s32 %v1198_v25  ;;  %v724_v8 = vsel %vm392_vm1, %v723_v34, %v719_v57  ;;  %v636_v12 = vshll.u32 %v635_v13, 16 }
 0x15b   :  { %v605_v38 = vpop.xlane.xlu0 %604  ;;  %v788_v5 = vsel %vm457_vm8, %v733_v36, %v724_v8 }
 0x15c   :  { %v1204_v35 = vadd.s32 %v1203_v0, %v1201_v20  ;;  %v608_v18 = vcvt.f32.s32 %v605_v38  ;;  %v789_v54 = vsel %vm459_vm9, %v742_v11, %v788_v5  ;;  %v938_v11 = vcvt.f32.s32 %v2508_v32 }
 0x15d   :  { %v2527_v22 = vpop.xlane.xlu1 %1251  ;;  %v1267_v5 = vcvt.f32.s32 %v2517_v62 }
 0x15e   :  { %v1369_v37 = vrot.slane %v1204_v35, %v2378_v27  ;;  %v611_v43 = vadd.s32 %v610_v4, %v608_v18 }
 0x15f   :  { %v2534_v31 = vpop.xlane.xlu0 %658 }
 0x160   :  { %v1374_v60 = vsel %vm392_vm1, %v1373_v55, %v1369_v37  ;;  %v750_v3 = vrot.slane %v611_v43, %v2380_v16  ;;  %v661_v46 = vcvt.f32.s32 %v2534_v31 }
 0x161   :  { %v1421_v6 = vsel %vm459_vm9, %v1374_v60, %v1420_v19  ;;  %v592_v42 = vpop.xlane.xlu1 %591  ;;  %v622_v60 = vcvt.f32.s32 %v2498_v30 }
 0x162   :  { %v595_v58 = vcvt.f32.s32 %v592_v42  ;;  %v662_v13 = vshll.u32 %v661_v46, 16 }
 0x163   :  { %v921_v39 = vpop.xlane.xlu0 %920  ;;  %v623_v34 = vshll.u32 %v622_v60, 16 }
 0x164   :  { %v598_v24 = vadd.s32 %v597_v52, %v595_v58  ;;  %v924_v19 = vcvt.f32.s32 %v921_v39  ;;  %v951_v52 = vcvt.f32.s32 %v2501_v49 }
 0x165   :  { %v2546_v59 = vpop.xlane.xlu1 %645 }
 0x166   :  { %v746_v44 = vrot.slane %v598_v24, %v2378_v27  ;;  %v927_v10 = vadd.s32 %v926_v63, %v924_v19  ;;  %v952_v39 = vshll.u32 %v951_v52, 16 }
 0x167   :  { %v2554_v2 = vpop.xlane.xlu0 %974 }
 0x168   :  { %v751_v33 = vsel %vm392_vm1, %v750_v3, %v746_v44  ;;  %v1066_v61 = vrot.slane %v927_v10, %v2380_v16  ;;  %v939_v44 = vshll.u32 %v938_v11, 16  ;;  %v977_v60 = vcvt.f32.s32 %v2554_v2 }
 0x169   :  { %v790_v41 = vsel %vm461_vm11, %v751_v33, %v789_v54  ;;  %v908_v25 = vpop.xlane.xlu1 %907 }
 0x16a   :  { %v911_v15 = vcvt.f32.s32 %v908_v25  ;;  %v978_v52 = vshll.u32 %v977_v60, 16 }
 0x16b   :  { %v1237_v20 = vpop.xlane.xlu0 %1236 }
 0x16c   :  { %v914_v0 = vadd.s32 %v913_v7, %v911_v15  ;;  %v1240_v28 = vcvt.f32.s32 %v1237_v20  ;;  %v1268_v7 = vshll.u32 %v1267_v5, 16  ;;  %v1254_v15 = vcvt.f32.s32 %v2527_v22 }
 0x16d   :  { %v2559_v45 = vpop.xlane.xlu1 %961 }
 0x16e   :  { %v1062_v55 = vrot.slane %v914_v0, %v2378_v27  ;;  %v1243_v35 = vadd.s32 %v1242_v56, %v1240_v28  ;;  %v1255_v28 = vshll.u32 %v1254_v15, 16 }
 0x16f   :  { %v2564_v38 = vpop.xlane.xlu0 %1290 }
 0x170   :  { %v1067_v14 = vsel %vm392_vm1, %v1066_v61, %v1062_v55  ;;  %v1382_v37 = vrot.slane %v1243_v35, %v2380_v16  ;;  %v1293_v11 = vcvt.f32.s32 %v2564_v38 }
 0x171   :  { %v1106_v4 = vsel %vm461_vm11, %v1067_v14, %v2522_v47  ;;  %v1224_v18 = vpop.xlane.xlu1 %1223 }
 0x172   :  { %v1227_v40 = vcvt.f32.s32 %v1224_v18  ;;  %v1294_v5 = vshll.u32 %v1293_v11, 16 }
 0x173   :  { %v631_v43 = vpop.xlane.xlu0 %630 }
 0x174   :  { %v1230_v29 = vadd.s32 %v1229_v1, %v1227_v40  ;;  %v634_v26 = vcvt.f32.s32 %v631_v43  ;;  %v648_v40 = vcvt.f32.s32 %v2546_v59 }
 0x175   :  { %v2570_v48 = vpop.xlane.xlu1 %1277 }
 0x176   :  { %v1378_v50 = vrot.slane %v1230_v29, %v2378_v27  ;;  %v637_v47 = vadd.s32 %v636_v12, %v634_v26  ;;  %v649_v12 = vshll.u32 %v648_v40, 16 }
 0x177   :  { %v2575_v42 = vpop.xlane.xlu0 %684 }
 0x178   :  { %v1383_v17 = vsel %vm392_vm1, %v1382_v37, %v1378_v50  ;;  %v759_v51 = vrot.slane %v637_v47, %v2380_v16 }
 0x179   :  { %v1422_v53 = vsel %vm461_vm11, %v1383_v17, %v1421_v6  ;;  %v618_v57 = vpop.xlane.xlu1 %617 }
 0x17a   :  { %v621_v58 = vcvt.f32.s32 %v618_v57 }
 0x17b   :  { %v947_v3 = vpop.xlane.xlu0 %946 }
 0x17c   :  { %v624_v36 = vadd.s32 %v623_v34, %v621_v58  ;;  %v950_v30 = vcvt.f32.s32 %v947_v3  ;;  %v964_v58 = vcvt.f32.s32 %v2559_v45 }
 0x17d   :  { %v2580_v24 = vpop.xlane.xlu1 %671 }
 0x17e   :  { %v755_v63 = vrot.slane %v624_v36, %v2378_v27  ;;  %v953_v6 = vadd.s32 %v952_v39, %v950_v30  ;;  %v965_v39 = vshll.u32 %v964_v58, 16 }
 0x17f   :  { %v2585_v8 = vpop.xlane.xlu0 %1000 }
 0x180   :  { %v760_v19 = vsel %vm392_vm1, %v759_v51, %v755_v63  ;;  %v1075_v54 = vrot.slane %v953_v6, %v2380_v16 }
 0x181   :  { %v791_v49 = vsel %vm463_vm13, %v760_v19, %v790_v41  ;;  %v934_v23 = vpop.xlane.xlu1 %933 }
 0x182   :  { %v937_v10 = vcvt.f32.s32 %v934_v23 }
 0x183   :  { %v1263_v9 = vpop.xlane.xlu0 %1262 }
 0x184   :  { %v940_v33 = vadd.s32 %v939_v44, %v937_v10  ;;  %v1266_v32 = vcvt.f32.s32 %v1263_v9  ;;  %v1280_v10 = vcvt.f32.s32 %v2570_v48 }
 0x185   :  { %v2590_v25 = vpop.xlane.xlu1 %987 }
 0x186   :  { %v1071_v61 = vrot.slane %v940_v33, %v2378_v27  ;;  %v1269_v41 = vadd.s32 %v1268_v7, %v1266_v32  ;;  %v1281_v7 = vshll.u32 %v1280_v10, 16 }
 0x187   :  { %v2595_v20 = vpop.xlane.xlu0 %1316 }
 0x188   :  { %v1076_v0 = vsel %vm392_vm1, %v1075_v54, %v1071_v61  ;;  %v1391_v35 = vrot.slane %v1269_v41, %v2380_v16  ;;  %v1319_v60 = vcvt.f32.s32 %v2595_v20 }
 0x189   :  { %v1107_v62 = vsel %vm463_vm13, %v1076_v0, %v1106_v4  ;;  %v1250_v56 = vpop.xlane.xlu1 %1249 }
 0x18a   :  { %v1253_v55 = vcvt.f32.s32 %v1250_v56 }
 0x18b   :  { %v657_v18 = vpop.xlane.xlu0 %656 }
 0x18c   :  { %v1256_v14 = vadd.s32 %v1255_v28, %v1253_v55  ;;  %v660_v22 = vcvt.f32.s32 %v657_v18  ;;  %v687_v18 = vcvt.f32.s32 %v2575_v42 }
 0x18d   :  { %v2600_v1 = vpop.xlane.xlu1 %1303 }
 0x18e   :  { %v1387_v37 = vrot.slane %v1256_v14, %v2378_v27  ;;  %v663_v4 = vadd.s32 %v662_v13, %v660_v22  ;;  %v674_v13 = vcvt.f32.s32 %v2580_v24  ;;  %v1306_v24 = vcvt.f32.s32 %v2600_v1 }
 0x18f   :  { %v2605_v43 = vpop.xlane.xlu0 %710 }
 0x190   :  { %v1392_v29 = vsel %vm392_vm1, %v1391_v35, %v1387_v37  ;;  %v768_v17 = vrot.slane %v663_v4, %v2380_v16  ;;  %v688_v4 = vshll.u32 %v687_v18, 16 }
 0x191   :  { %v1423_v31 = vsel %vm463_vm13, %v1392_v29, %v1422_v53  ;;  %v644_v26 = vpop.xlane.xlu1 %643  ;;  %v1003_v29 = vcvt.f32.s32 %v2585_v8 }
 0x192   :  { %v647_v50 = vcvt.f32.s32 %v644_v26  ;;  %v990_v26 = vcvt.f32.s32 %v2590_v25 }
 0x193   :  { %v973_v57 = vpop.xlane.xlu0 %972 }
 0x194   :  { %v650_v47 = vadd.s32 %v649_v12, %v647_v50  ;;  %v976_v59 = vcvt.f32.s32 %v973_v57  ;;  %v991_v8 = vshll.u32 %v990_v26, 16 }
 0x195   :  { %v2610_v34 = vpop.xlane.xlu1 %697 }
 0x196   :  { %v764_v51 = vrot.slane %v650_v47, %v2378_v27  ;;  %v979_v53 = vadd.s32 %v978_v52, %v976_v59  ;;  %v675_v47 = vshll.u32 %v674_v13, 16  ;;  %v1004_v59 = vshll.u32 %v1003_v29, 16 }
 0x197   :  { %v2615_v3 = vpop.xlane.xlu0 %1026  ;;  %v700_v52 = vcvt.f32.s32 %v2610_v34 }
 0x198   :  { %v769_v36 = vsel %vm392_vm1, %v768_v17, %v764_v51  ;;  %v1084_v19 = vrot.slane %v979_v53, %v2380_v16  ;;  %v1029_v25 = vcvt.f32.s32 %v2615_v3 }
 0x199   :  { %v960_v30 = vpop.xlane.xlu1 %959  ;;  %v2618_v2 = vsel %vm465_vm4, %v769_v36, %v791_v49  ;;  %v1320_v36 = vshll.u32 %v1319_v60, 16  ;;  %v701_v1 = vshll.u32 %v700_v52, 16 }
 0x19a   :  { %v963_v63 = vcvt.f32.s32 %v960_v30 }
 0x19b   :  { %v1289_v23 = vpop.xlane.xlu0 %1288 }
 0x19c   :  { %v966_v6 = vadd.s32 %v965_v39, %v963_v63  ;;  %v1292_v44 = vcvt.f32.s32 %v1289_v23 }
 0x19d   :  { %v2622_v45 = vpop.xlane.xlu1 %1013 }
 0x19e   :  { %v1080_v54 = vrot.slane %v966_v6, %v2378_v27  ;;  %v1295_v49 = vadd.s32 %v1294_v5, %v1292_v44  ;;  %v1016_v20 = vcvt.f32.s32 %v2622_v45  ;;  %v1307_v6 = vshll.u32 %v1306_v24, 16 }
 0x19f   :  { %v2627_v9 = vpop.xlane.xlu0 %1342 }
 0x1a0   :  { %v1085_v33 = vsel %vm392_vm1, %v1084_v19, %v1080_v54  ;;  %v1400_v61 = vrot.slane %v1295_v49, %v2380_v16  ;;  %v1345_v44 = vcvt.f32.s32 %v2627_v9  ;;  %v1030_v54 = vshll.u32 %v1029_v25, 16 }
 0x1a1   :  { %v1276_v32 = vpop.xlane.xlu1 %1275  ;;  %v2630_v38 = vsel %vm465_vm4, %v1085_v33, %v1107_v62  ;;  %v1017_v45 = vshll.u32 %v1016_v20, 16 }
 0x1a2   :  { %v1279_v15 = vcvt.f32.s32 %v1276_v32 }
 0x1a4   :  { %v1282_v0 = vadd.s32 %v1281_v7, %v1279_v15  ;;  %v474_v41 = vpop.xlane.xlu0 %473 }
 0x1a5   :  { %v2634_v48 = vpop.xlane.xlu1 %1329  ;;  %v475_v56 = vmul.f32 0.00390625, %v474_v41 }
 0x1a6   :  { %v1396_v28 = vrot.slane %v1282_v0, %v2378_v27 }
 0x1a7   :  { %v1446_v46 = vsel %vm1445_vm12, %v475_v56, 0.0  ;;  %v1332_v56 = vcvt.f32.s32 %v2634_v48 }
 0x1a8   :  { %v1401_v55 = vsel %vm392_vm1, %v1400_v61, %v1396_v28  ;;  %1447 = vst [vmem:[#allocation7] sm:$0xff] %v1446_v46  ;;  %v683_v62 = vpop.xlane.xlu0 %682 }
 0x1a9   :  { %v670_v35 = vpop.xlane.xlu1 %669  ;;  %v2641_v14 = vsel %vm465_vm4, %v1401_v55, %v1423_v31  ;;  %v686_v40 = vcvt.f32.s32 %v683_v62  ;;  %v713_v31 = vcvt.f32.s32 %v2605_v43  ;;  %v1346_v55 = vshll.u32 %v1345_v44, 16 }
 0x1aa   :  { %v673_v12 = vcvt.f32.s32 %v670_v35  ;;  %v1333_v60 = vshll.u32 %v1332_v56, 16 }
 0x1ab   :  { %v689_v57 = vadd.s32 %v688_v4, %v686_v40  ;;  %v714_v39 = vshll.u32 %v713_v31, 16 }
 0x1ac   :  { %v999_v22 = vpop.xlane.xlu0 %998  ;;  %v676_v51 = vadd.s32 %v675_v47, %v673_v12 }
 0x1ad   :  { %v986_v37 = vpop.xlane.xlu1 %985  ;;  %v1002_v50 = vcvt.f32.s32 %v999_v22  ;;  %v777_v43 = vrot.slane %v689_v57, %v2380_v16 }
 0x1ae   :  { %v989_v58 = vcvt.f32.s32 %v986_v37  ;;  %v773_v5 = vrot.slane %v676_v51, %v2378_v27 }
 0x1af   :  { %v1005_v53 = vadd.s32 %v1004_v59, %v1002_v50 }
 0x1b0   :  { %v1315_v17 = vpop.xlane.xlu0 %1314  ;;  %v992_v23 = vadd.s32 %v991_v8, %v989_v58  ;;  %v778_v7 = vsel %vm392_vm1, %v777_v43, %v773_v5 }
 0x1b1   :  { %v1302_v42 = vpop.xlane.xlu1 %1301  ;;  %v1318_v11 = vcvt.f32.s32 %v1315_v17  ;;  %v1093_v33 = vrot.slane %v1005_v53, %v2380_v16  ;;  %v793_v37 = vsel %vm467_vm7, %v778_v7, %v2618_v2 }
 0x1b2   :  { %v1305_v10 = vcvt.f32.s32 %v1302_v42  ;;  %v1089_v9 = vrot.slane %v992_v23, %v2378_v27 }
 0x1b3   :  { %v1321_v15 = vadd.s32 %v1320_v36, %v1318_v11 }
 0x1b4   :  { %v709_v30 = vpop.xlane.xlu0 %708  ;;  %v1308_v62 = vadd.s32 %v1307_v6, %v1305_v10  ;;  %v1094_v18 = vsel %vm392_vm1, %v1093_v33, %v1089_v9 }
 0x1b5   :  { %v696_v63 = vpop.xlane.xlu1 %695  ;;  %v712_v19 = vcvt.f32.s32 %v709_v30  ;;  %v1409_v29 = vrot.slane %v1321_v15, %v2380_v16  ;;  %v1109_v24 = vsel %vm467_vm7, %v1094_v18, %v2630_v38 }
 0x1b6   :  { %v699_v34 = vcvt.f32.s32 %v696_v63  ;;  %v1405_v31 = vrot.slane %v1308_v62, %v2378_v27 }
 0x1b7   :  { %v715_v3 = vadd.s32 %v714_v39, %v712_v19 }
 0x1b8   :  { %v702_v49 = vadd.s32 %v701_v1, %v699_v34  ;;  %v1025_v32 = vpop.xlane.xlu0 %1024  ;;  %v1410_v52 = vsel %vm392_vm1, %v1409_v29, %v1405_v31 }
 0x1b9   :  { %v786_v61 = vrot.slane %v715_v3, %v2380_v16  ;;  %v1012_v0 = vpop.xlane.xlu1 %1011  ;;  %v1028_v41 = vcvt.f32.s32 %v1025_v32  ;;  %v1425_v30 = vsel %vm467_vm7, %v1410_v52, %v2641_v14 }
 0x1ba   :  { %v782_v28 = vrot.slane %v702_v49, %v2378_v27  ;;  %v1015_v46 = vcvt.f32.s32 %v1012_v0 }
 0x1bb   :  { %v1031_v35 = vadd.s32 %v1030_v54, %v1028_v41 }
 0x1bc   :  { %v1018_v22 = vadd.s32 %v1017_v45, %v1015_v46  ;;  %v1341_v13 = vpop.xlane.xlu0 %1340  ;;  %v787_v40 = vsel %vm392_vm1, %v786_v61, %v782_v28 }
 0x1bd   :  { %v1102_v48 = vrot.slane %v1031_v35, %v2380_v16  ;;  %v1328_v4 = vpop.xlane.xlu1 %1327  ;;  %v1344_v26 = vcvt.f32.s32 %v1341_v13  ;;  %v794_v12 = vsel %vm469_vm10, %v787_v40, %v793_v37 }
 0x1be   :  { %v1098_v50 = vrot.slane %v1018_v22, %v2378_v27  ;;  %v1331_v17 = vcvt.f32.s32 %v1328_v4  ;;  %v795_v47 = vsel %vm316_vm3, %v794_v12, 0 }
 0x1bf   :  { %v1347_v57 = vadd.s32 %v1346_v55, %v1344_v26  ;;  %v797_v42 = vshrl.u32 %v795_v47, 16  ;;  %v796_v38 = vand.u32 65535, %v795_v47 }
 0x1c0   :  { %v1334_v59 = vadd.s32 %v1333_v60, %v1331_v17  ;;  %v1103_v2 = vsel %vm392_vm1, %v1102_v48, %v1098_v50 }
 0x1c1   :  { %v1418_v58 = vrot.slane %v1347_v57, %v2380_v16  ;;  %v799_v8 = vcvt.s32.f32 %v797_v42  ;;  %v1110_v51 = vsel %vm469_vm10, %v1103_v2, %v1109_v24  ;;  %v798_v63 = vcvt.s32.f32 %v796_v38 }
 0x1c2   :  { %v1414_v36 = vrot.slane %v1334_v59, %v2378_v27  ;;  %v1111_v25 = vsel %vm316_vm3, %v1110_v51, 0 }
 0x1c3   :  { %802 = vadd.xlane.f32.xlu1 %v799_v8  ;;  %v1113_v20 = vshrl.u32 %v1111_v25, 16  ;;  %v1112_v27 = vand.u32 65535, %v1111_v25 }
 0x1c4   :  { %v1419_v53 = vsel %vm392_vm1, %v1418_v58, %v1414_v36 }
 0x1c5   :  { %v1115_v39 = vcvt.s32.f32 %v1113_v20  ;;  %v1426_v43 = vsel %vm469_vm10, %v1419_v53, %v1425_v30  ;;  %v1114_v1 = vcvt.s32.f32 %v1112_v27 }
 0x1c6   :  { %v1427_v16 = vsel %vm316_vm3, %v1426_v43, 0 }
 0x1c7   :  { %1118 = vadd.xlane.f32.xlu0 %v1115_v39  ;;  %v1429_v11 = vshrl.u32 %v1427_v16, 16  ;;  %v1428_v6 = vand.u32 65535, %v1427_v16 }
 0x1c9   :  { %v1431_v19 = vcvt.s32.f32 %v1429_v11  ;;  %v1430_v23 = vcvt.s32.f32 %v1428_v6 }
 0x1cb   :  { %800 = vadd.xlane.f32.xlu0 %v798_v63  ;;  %1434 = vadd.xlane.f32.xlu1 %v1431_v19 }
 0x1cf   :  { %1116 = vadd.xlane.f32.xlu1 %v1114_v1  ;;  %1432 = vadd.xlane.f32.xlu0 %v1430_v23 }
 0x1d0   :  { %1615 = shalt.err (!%p1612_p6)
}
 0x1d1   :  { %s1616_s16 = scalar_lea.hbm %s2716_s2, 128 }
 0x1d2   :  { %p1617_p7 = scmp.ne.s32.totalorder %s2716_s2, %s1616_s16  ;;  %p1620_p8 = scmp.lt.u32.totalorder %s1616_s16, %s2716_s2 }
 0x1d4   :  { %p1622_p9 = pnand %p1620_p8, %p1617_p7 }
 0x1d6   :  { %1625 = shalt.err (!%p1622_p9)
}
 0x1d7   :  { %1468 = dma.vmem_to_hbm [thread:$0]  %s1466_s12, 128, %s2716_s2, [#allocation4]   ;;  %vm1449_vm3 = vcmp.eq.s32.totalorder %v2353_v21, 1  ;;  %vm1452_vm15 = vcmp.eq.s32.totalorder %v2353_v21, 2  ;;  %vm1455_vm14 = vcmp.eq.s32.totalorder %v2353_v21, 3 }
 0x1d8   :  { %s1662_s2 = smov [#allocation8]  }
 0x1d9   :  { %s1475_s23 = sshll.u32 %s1662_s2, 4  ;;  %s1476_s23 = int_to_ptr.vmem [resolvable:$true] %s1475_s23 }
 0x1da   :  { %s1626_s24 = scalar_lea.vmem %s1476_s23, 128  ;;  %p1631_p11 = scmp.lt.s32.totalorder %s1476_s23, %s1476_s23 }
 0x1db   :  { %p1627_p10 = scmp.ne.s32.totalorder %s1476_s23, %s1626_s24  ;;  %p1632_p12 = scmp.lt.s32.totalorder %s1626_s24, %s1626_s24 }
 0x1dd   :  { %p1633_p13 = por %p1632_p12, %p1631_p11 }
 0x1df   :  { %p1634_p0 = pnand %p1633_p13, %p1627_p10 }
 0x250   :  { %v803_v14 = vpop.xlane.xlu1 %802 }
 0x251   :  { %v805_v44 = vcvt.f32.s32 %v803_v14 }
 0x253   :  { %v806_v33 = vshll.u32 %v805_v44, 16 }
 0x254   :  { %v1119_v34 = vpop.xlane.xlu0 %1118 }
 0x255   :  { %v1121_v3 = vcvt.f32.s32 %v1119_v34 }
 0x257   :  { %v1122_v7 = vshll.u32 %v1121_v3, 16 }
 0x258   :  { %v801_v5 = vpop.xlane.xlu0 %800  ;;  %v1435_v10 = vpop.xlane.xlu1 %1434 }
 0x259   :  { %v1437_v54 = vcvt.f32.s32 %v1435_v10  ;;  %v804_v45 = vcvt.f32.s32 %v801_v5 }
 0x25b   :  { %v1438_v15 = vshll.u32 %v1437_v54, 16  ;;  %v807_v41 = vadd.s32 %v806_v33, %v804_v45 }
 0x25c   :  { %v1433_v49 = vpop.xlane.xlu0 %1432  ;;  %v1117_v32 = vpop.xlane.xlu1 %1116 }
 0x25d   :  { %v1436_v61 = vcvt.f32.s32 %v1433_v49  ;;  %v1120_v0 = vcvt.f32.s32 %v1117_v32  ;;  %v1448_v62 = vsel %vm1445_vm12, %v807_v41, 0 }
 0x25f   :  { %v1439_v56 = vadd.s32 %v1438_v15, %v1436_v61  ;;  %v1123_v9 = vadd.s32 %v1122_v7, %v1120_v0 }
 0x261   :  { %v1441_v28 = vsub.s32 %v1439_v56, %v807_v41  ;;  %v1440_v46 = vsub.s32 %v1123_v9, %v807_v41  ;;  %v1442_v55 = vsub.s32 256, %v1123_v9 }
 0x263   :  { %v1450_v35 = vsel %vm1449_vm3, %v1441_v28, 0  ;;  %v1443_v18 = vsub.s32 %v1442_v55, %v1439_v56  ;;  %v1453_v13 = vsel %vm1452_vm15, %v1440_v46, 0 }
 0x264   :  { %v1451_v22 = vadd.s32 %v1450_v35, %v1448_v62 }
 0x265   :  { %v1444_v40 = vadd.s32 %v1443_v18, %v807_v41 }
 0x266   :  { %v1454_v37 = vadd.s32 %v1453_v13, %v1451_v22 }
 0x267   :  { %v1456_v29 = vsel %vm1455_vm14, %v1444_v40, 0 }
 0x268   :  { %v1457_v48 = vadd.s32 %v1456_v29, %v1454_v37 }
 0x26a   :  { %1458 = vst [vmem:[#allocation8] sm:$0xff] %v1457_v48 }
 0x26b   :  { %1637 = shalt.err (!%p1634_p0)
}
 0x26c   :  { %s1638_s27 = scalar_lea.hbm %s2717_s3, 128 }
 0x26d   :  { %p1639_p1 = scmp.ne.s32.totalorder %s2717_s3, %s1638_s27  ;;  %p1642_p2 = scmp.lt.u32.totalorder %s1638_s27, %s2717_s3 }
 0x26f   :  { %p1644_p3 = pnand %p1642_p2, %p1639_p1 }
 0x271   :  { %1647 = shalt.err (!%p1644_p3)
}
 0x272   :  { %1478 = dma.vmem_to_hbm [thread:$0]  %s1476_s23, 128, %s2717_s3, [#allocation9]  }
 0x273   :  { %1652 = dma.done.wait [#allocation4], 128  }
 0x274   :  { %1653 = vsyncadd [#allocation4], 4294967168 }
 0x275   :  { %1654 = dma.done.wait [#allocation9], 128  }
 0x276   :  { %1655 = vsyncadd [#allocation9], 4294967168 }
 0x277   :  { %1485 = vsyncpa [#allocation3], 1 }
 0x278   :  { %1486 = vsyncpa [#allocation6], 1 }
 0x279   :  { %1487 = vsyncpa [#allocation4], 1 }
 0x27a   :  { %1488 = vsyncpa [#allocation9], 1 }

</bundles_post_ra>
